<compile_context>
chip_gen: v7x
topology: tpu7x:2x2x1
jax: 0.10.0
libtpu: 0.0.40
codegen_flags: <defaults>
</compile_context>

<pallas_src>
import math
from functools import partial

import jax
import jax.numpy as jnp
from jax import lax
from jax.experimental import pallas as pl
from jax.experimental.pallas import tpu as pltpu

DILATIONS = (1, 3, 9)


# --------------------------------- kernel -----------------------------------
def _make_kernel(stride, cin, cout, L0, L, halo, bt, rows):
    kup = 2 * stride
    up_left_pad = stride - 1      # PyTorch 'same' left pad for even kernel 2*stride

    def kernel(x_ref, u_ref, a0_ref, a0i_ref, wup_ref, ra_ref, rai_ref,
               w7_ref, b7_ref, w1_ref, b1_ref, gb_ref, o_ref, pad_ref):
        # x_ref:   (bt, Cin, L0)     coarse-grid input tile (pre-upsample)
        # u_ref:   (L0, L)           0/1 nearest-upsample expansion matrix (bf16)
        # wup_ref: (Cout, Kup*Cin)   lane-dense folded upsample-conv weights (bf16)
        # w7_ref:  (3, Cout, 7*Cout) lane-dense folded dilated-conv weights (bf16)
        # w1_ref:  (3, Cout, Cout)   1x1 conv weights (bf16)
        # a0/a0i, ra/rai: snake alphas and precomputed reciprocals (f32)
        # gb_ref:  (3, 2, 1, 1)      [sqrt(1-beta^2), beta] per res block (f32)
        # pad_ref: (rows, L+2*halo)  f32 scratch slab, zero halo stripes

        # Zero only the halo stripes (128-lane aligned).  The centre columns are
        # always fully rewritten before being read, so nothing else needs init.
        pad_ref[:, :halo] = jnp.zeros((rows, halo), jnp.float32)
        pad_ref[:, halo + L:] = jnp.zeros((rows, halo), jnp.float32)

        def snake(v, a, a_inv):
            s = jnp.sin(a * v)
            return v + s * s * a_inv

        def conv_from_slab(w_bf16, bias, K, dilation, left_pad, c):
            # out[co, l] = sum_{k,ci} w[co, k*c+ci] * slab[ci, halo + l + k*dil - left_pad]
            taps = []
            for k in range(K):
                off = halo + k * dilation - left_pad      # static lane offset
                taps.append(pad_ref[:c, off:off + L])
            slab = jnp.concatenate(taps, axis=0).astype(jnp.bfloat16)
            y = jnp.dot(w_bf16, slab, preferred_element_type=jnp.float32)
            if bias is not None:
                y = y + bias
            return y

        u = u_ref[...]                                    # hoisted, (L0, L) bf16

        for b in range(bt):
            x = x_ref[b]                                  # (Cin, L0) f32
            # snake on the coarse grid, then fused nearest-upsample as one MXU
            # matmul (exact: one nonzero bf16 term per output column).
            h0 = snake(x, a0_ref[...], a0i_ref[...]).astype(jnp.bfloat16)
            xup = jnp.dot(h0, u, preferred_element_type=jnp.float32)   # (Cin, L)
            pad_ref[:cin, halo:halo + L] = xup
            h = conv_from_slab(wup_ref[...], None, kup, 1, up_left_pad, cin)

            for i, dil in enumerate(DILATIONS):           # TemporalResBlocks
                y = snake(h, ra_ref[i, 0], rai_ref[i, 0])
                pad_ref[:cout, halo:halo + L] = y
                y = conv_from_slab(w7_ref[i], b7_ref[i], 7, dil, 3 * dil, cout)
                y = snake(y, ra_ref[i, 1], rai_ref[i, 1])
                y = jnp.dot(w1_ref[i], y.astype(jnp.bfloat16),
                            preferred_element_type=jnp.float32) + b1_ref[i]
                h = gb_ref[i, 0] * h + gb_ref[i, 1] * y   # sqrt(1-b^2)*h + b*y

            o_ref[b] = h.astype(o_ref.dtype)

    return kernel


# -------------------------------- wrapper -----------------------------------
@partial(jax.jit, static_argnames=("stride", "batch_tile"))
def decoder_block_forward(x, kp, stride, batch_tile=1):
    N, Cin, L0 = x.shape
    L = L0 * stride                       # output lane width; 128-multiple is ideal
    Cout = kp["wup"].shape[0]
    assert N % batch_tile == 0
    cmax = max(Cin, Cout)
    rows = ((cmax + 7) // 8) * 8          # f32 sublane-tile aligned slab rows
    # halo along lanes, rounded to a multiple of 128 so centre stores are aligned
    reach = max(3 * max(DILATIONS), 2 * stride)
    halo = ((reach + 127) // 128) * 128

    # nearest-upsample expansion matrix (0/1): x_up[:, l] = x[:, l // stride]
    u = (jnp.arange(L)[None, :] // stride
         == jnp.arange(L0)[:, None]).astype(jnp.bfloat16)

    kernel = _make_kernel(stride, Cin, Cout, L0, L, halo, batch_tile, rows)

    grid_spec = pltpu.PrefetchScalarGridSpec(
        num_scalar_prefetch=0,
        grid=(N // batch_tile,),
        in_specs=[
            pl.BlockSpec((batch_tile, Cin, L0), lambda n: (n, 0, 0)),
            pl.BlockSpec(u.shape, lambda n: (0, 0)),
            pl.BlockSpec(kp["a0"].shape, lambda n: (0, 0)),
            pl.BlockSpec(kp["a0inv"].shape, lambda n: (0, 0)),
            pl.BlockSpec(kp["wup"].shape, lambda n: (0, 0)),
            pl.BlockSpec(kp["ra"].shape, lambda n: (0, 0, 0, 0)),
            pl.BlockSpec(kp["rainv"].shape, lambda n: (0, 0, 0, 0)),
            pl.BlockSpec(kp["w7"].shape, lambda n: (0, 0, 0)),
            pl.BlockSpec(kp["b7"].shape, lambda n: (0, 0, 0)),
            pl.BlockSpec(kp["w1"].shape, lambda n: (0, 0, 0)),
            pl.BlockSpec(kp["b1"].shape, lambda n: (0, 0, 0)),
            pl.BlockSpec(kp["gb"].shape, lambda n: (0, 0, 0, 0)),
        ],
        out_specs=pl.BlockSpec((batch_tile, Cout, L), lambda n: (n, 0, 0)),
        scratch_shapes=[pltpu.VMEM((rows, L + 2 * halo), jnp.float32)],
    )
    return pl.pallas_call(
        kernel,
        out_shape=jax.ShapeDtypeStruct((N, Cout, L), jnp.float32),
        grid_spec=grid_spec,
        compiler_params=pltpu.CompilerParams(
            dimension_semantics=("parallel",),          # batch axis -> both v7x TCs
            vmem_limit_bytes=32 * 1024 * 1024),
    )(x, u, kp["a0"], kp["a0inv"], kp["wup"], kp["ra"], kp["rainv"],
      kp["w7"], kp["b7"], kp["w1"], kp["b1"], kp["gb"])


# -------------------------- deterministic params ----------------------------
def init_params(key, in_channels, out_channels, stride):
    kup = 2 * stride
    ks = jax.random.split(key, 16)

    def w_init(k, shape):  # PyTorch conv layout (Cout, Cin, K)
        fan_in = shape[1] * shape[2]
        return jax.random.normal(k, shape, jnp.float32) / math.sqrt(fan_in)

    p = {}
    p["a0"] = jax.random.uniform(ks[0], (in_channels,), jnp.float32, 0.5, 1.5)
    p["wup_pt"] = w_init(ks[1], (out_channels, in_channels, kup))
    p["ra"] = jax.random.uniform(ks[2], (3, 2, out_channels), jnp.float32, 0.5, 1.5)
    p["w7_pt"] = jnp.stack([w_init(ks[3 + i], (out_channels, out_channels, 7))
                            for i in range(3)])
    p["b7"] = jax.random.normal(ks[6], (3, out_channels), jnp.float32) * 0.1
    p["w1_pt"] = jnp.stack([w_init(ks[7 + i], (out_channels, out_channels, 1))
                            for i in range(3)])
    p["b1"] = jax.random.normal(ks[10], (3, out_channels), jnp.float32) * 0.1
    p["beta"] = jax.random.normal(ks[11], (3,), jnp.float32) * 0.1   # N(0, 0.1)
    return p


def to_kernel_params(p):
    cout, cin, kup = p["wup_pt"].shape
    cin7 = p["w7_pt"].shape[2]
    # lane-dense tap-folded weights: col index = k*Cin + ci
    wup = jnp.transpose(p["wup_pt"], (0, 2, 1)).reshape(cout, kup * cin)
    w7 = jnp.transpose(p["w7_pt"], (0, 1, 3, 2)).reshape(3, cout, 7 * cin7)
    w1 = p["w1_pt"][..., 0]                                   # (3, Cout, Cout)
    beta = p["beta"]
    gamma = jnp.sqrt(1.0 - beta ** 2)
    gb = jnp.stack([gamma, beta], axis=1)[..., None, None]    # (3, 2, 1, 1)
    return dict(
        a0=p["a0"][:, None],                                  # (Cin, 1)
        a0inv=(1.0 / p["a0"])[:, None],
        wup=wup.astype(jnp.bfloat16),                         # (Cout, Kup*Cin)
        ra=p["ra"][..., None],                                # (3, 2, Cout, 1)
        rainv=(1.0 / p["ra"])[..., None],
        w7=w7.astype(jnp.bfloat16),                           # (3, Cout, 7*Cout)
        b7=p["b7"][..., None],                                # (3, Cout, 1)
        w1=w1.astype(jnp.bfloat16),                           # (3, Cout, Cout)
        b1=p["b1"][..., None],                                # (3, Cout, 1)
        gb=gb,                                                # (3, 2, 1, 1)
    )


# ----------------------------- pure-JAX reference ---------------------------
def _snake_ref(x, alpha):                 # x (N,C,L), alpha (C,)
    a = alpha[None, :, None]
    return x + jnp.sin(a * x) ** 2 / a


def _conv1d_ref(x, w_pt, b, dilation, pad_l, pad_r):
    # bf16 operands / f32 accumulation, matching the kernel's MXU precision.
    xp = jnp.pad(x, ((0, 0), (0, 0), (pad_l, pad_r)))
    out = lax.conv_general_dilated(
        xp.astype(jnp.bfloat16), w_pt.astype(jnp.bfloat16),
        window_strides=(1,), padding="VALID",
        rhs_dilation=(dilation,),
        dimension_numbers=("NCH", "OIH", "NCH"),
        preferred_element_type=jnp.float32)
    if b is not None:
        out = out + b[None, :, None]
    return out


def decoder_block_ref(x, p, stride):
    h = _snake_ref(x, p["a0"])
    h = jnp.repeat(h, stride, axis=-1)                # nn.Upsample(nearest)
    total = 2 * stride - 1                            # PyTorch 'same', even kernel
    h = _conv1d_ref(h, p["wup_pt"], None, 1, total // 2, total - total // 2)
    for i, dil in enumerate(DILATIONS):
        y = _snake_ref(h, p["ra"][i, 0])
        y = _conv1d_ref(y, p["w7_pt"][i], p["b7"][i], dil, 3 * dil, 3 * dil)
        y = _snake_ref(y, p["ra"][i, 1])
        y = _conv1d_ref(y, p["w1_pt"][i], p["b1"][i], 1, 0, 0)
        beta = p["beta"][i]
        h = jnp.sqrt(1.0 - beta ** 2) * h + beta * y
    return h


# ----------------------------------- main ------------------------------------
if __name__ == "__main__":
    key = jax.random.PRNGKey(0)
    kx, kparam = jax.random.split(key)

    N, Cin, Cout, stride, L0 = 2, 8, 8, 2, 64          # output length = 128
    x = jax.random.normal(kx, (N, Cin, L0), jnp.float32)
    p = init_params(kparam, Cin, Cout, stride)
    kp = to_kernel_params(p)

    out = decoder_block_forward(x, kp, stride, batch_tile=1)
    out = jax.block_until_ready(out)

    ref = decoder_block_ref(x, p, stride)
    assert out.shape == (N, Cout, L0 * stride), out.shape
    err = float(jnp.max(jnp.abs(out - ref)))
    assert jnp.allclose(out, ref, atol=2e-2, rtol=2e-2), err
    print("KERNEL_OK")
</pallas_src>

<mosaic_0001>
module attributes {stable_mosaic.version = 11 : i64} {
  func.func @kernel(%arg0: i32, %arg1: memref<1x8x64xf32, #tpu.memory_space<vmem>>, %arg2: memref<64x128xbf16, #tpu.memory_space<vmem>>, %arg3: memref<8x1xf32, #tpu.memory_space<vmem>>, %arg4: memref<8x1xf32, #tpu.memory_space<vmem>>, %arg5: memref<8x32xbf16, #tpu.memory_space<vmem>>, %arg6: memref<3x2x8x1xf32, #tpu.memory_space<vmem>>, %arg7: memref<3x2x8x1xf32, #tpu.memory_space<vmem>>, %arg8: memref<3x8x56xbf16, #tpu.memory_space<vmem>>, %arg9: memref<3x8x1xf32, #tpu.memory_space<vmem>>, %arg10: memref<3x8x8xbf16, #tpu.memory_space<vmem>>, %arg11: memref<3x8x1xf32, #tpu.memory_space<vmem>>, %arg12: memref<3x2x1x1xf32, #tpu.memory_space<vmem>>, %arg13: memref<1x8x128xf32, #tpu.memory_space<vmem>>, %arg14: memref<8x384xf32, #tpu.memory_space<vmem>>) attributes {dimension_semantics = [#tpu.dimension_semantics<parallel>], iteration_bounds = array<i64: 2>, scalar_prefetch = 0 : i64, scratch_operands = 1 : i64, tpu.core_type = #tpu.core_type<tc>, window_params = [{transform_indices = @transform_0, window_bounds = array<i64: 1, 8, 64>}, {pipeline_mode = #tpu.pipeline_mode<synchronous>, transform_indices = @transform_1, window_bounds = array<i64: 64, 128>}, {pipeline_mode = #tpu.pipeline_mode<synchronous>, transform_indices = @transform_2, window_bounds = array<i64: 8, 1>}, {pipeline_mode = #tpu.pipeline_mode<synchronous>, transform_indices = @transform_3, window_bounds = array<i64: 8, 1>}, {pipeline_mode = #tpu.pipeline_mode<synchronous>, transform_indices = @transform_4, window_bounds = array<i64: 8, 32>}, {pipeline_mode = #tpu.pipeline_mode<synchronous>, transform_indices = @transform_5, window_bounds = array<i64: 3, 2, 8, 1>}, {pipeline_mode = #tpu.pipeline_mode<synchronous>, transform_indices = @transform_6, window_bounds = array<i64: 3, 2, 8, 1>}, {pipeline_mode = #tpu.pipeline_mode<synchronous>, transform_indices = @transform_7, window_bounds = array<i64: 3, 8, 56>}, {pipeline_mode = #tpu.pipeline_mode<synchronous>, transform_indices = @transform_8, window_bounds = array<i64: 3, 8, 1>}, {pipeline_mode = #tpu.pipeline_mode<synchronous>, transform_indices = @transform_9, window_bounds = array<i64: 3, 8, 8>}, {pipeline_mode = #tpu.pipeline_mode<synchronous>, transform_indices = @transform_10, window_bounds = array<i64: 3, 8, 1>}, {pipeline_mode = #tpu.pipeline_mode<synchronous>, transform_indices = @transform_11, window_bounds = array<i64: 3, 2, 1, 1>}, {transform_indices = @transform_12, window_bounds = array<i64: 1, 8, 128>}]} {
    %cst = arith.constant 0.000000e+00 : f32
    %0 = vector.broadcast %cst : f32 to vector<8x128xf32>
    %c0 = arith.constant 0 : index
    %c0_0 = arith.constant 0 : index
    %1 = vector.load %arg14[%c0, %c0_0] : memref<8x384xf32, #tpu.memory_space<vmem>>, vector<8x128xf32>
    tpu.vector_store %arg14[%c0, %c0_0], %0 {strides = array<i32>} : memref<8x384xf32, #tpu.memory_space<vmem>>, vector<8x128xf32>,
    %cst_1 = arith.constant 0.000000e+00 : f32
    %2 = vector.broadcast %cst_1 : f32 to vector<8x128xf32>
    %c0_2 = arith.constant 0 : index
    %c256 = arith.constant 256 : index
    %3 = vector.load %arg14[%c0_2, %c256] : memref<8x384xf32, #tpu.memory_space<vmem>>, vector<8x128xf32>
    tpu.vector_store %arg14[%c0_2, %c256], %2 {strides = array<i32>} : memref<8x384xf32, #tpu.memory_space<vmem>>, vector<8x128xf32>,
    %c0_3 = arith.constant 0 : index
    %c0_4 = arith.constant 0 : index
    %4 = vector.load %arg2[%c0_3, %c0_4] : memref<64x128xbf16, #tpu.memory_space<vmem>>, vector<64x128xbf16>
    %c0_5 = arith.constant 0 : index
    %c0_6 = arith.constant 0 : index
    %c0_7 = arith.constant 0 : index
    %5 = vector.load %arg1[%c0_5, %c0_6, %c0_7] : memref<1x8x64xf32, #tpu.memory_space<vmem>>, vector<1x8x64xf32>
    %6 = vector.shape_cast %5 : vector<1x8x64xf32> to vector<8x64xf32>
    %c0_8 = arith.constant 0 : index
    %c0_9 = arith.constant 0 : index
    %7 = vector.load %arg3[%c0_8, %c0_9] : memref<8x1xf32, #tpu.memory_space<vmem>>, vector<8x1xf32>
    %c0_10 = arith.constant 0 : index
    %c0_11 = arith.constant 0 : index
    %8 = vector.load %arg4[%c0_10, %c0_11] : memref<8x1xf32, #tpu.memory_space<vmem>>, vector<8x1xf32>
    %9 = vector.broadcast %7 : vector<8x1xf32> to vector<8x64xf32>
    %10 = arith.mulf %9, %6 : vector<8x64xf32>
    %11 = math.sin %10 : vector<8x64xf32>
    %12 = arith.mulf %11, %11 : vector<8x64xf32>
    %13 = vector.broadcast %8 : vector<8x1xf32> to vector<8x64xf32>
    %14 = arith.mulf %12, %13 : vector<8x64xf32>
    %15 = arith.addf %6, %14 : vector<8x64xf32>
    %16 = arith.truncf %15 : vector<8x64xf32> to vector<8x64xbf16>
    %cst_12 = arith.constant dense<0.000000e+00> : vector<8x128xf32>
    %17 = tpu.matmul %16, %4, %cst_12 {dimension_numbers = #tpu.dot_dimension_numbers<[1], [0], [0], [1], [0, 0, 1, 1], [], []>} : vector<8x64xbf16>, vector<64x128xbf16>, vector<8x128xf32> -> vector<8x128xf32>
    %c0_13 = arith.constant 0 : index
    %c128 = arith.constant 128 : index
    %18 = vector.load %arg14[%c0_13, %c128] : memref<8x384xf32, #tpu.memory_space<vmem>>, vector<8x128xf32>
    tpu.vector_store %arg14[%c0_13, %c128], %17 {strides = array<i32>} : memref<8x384xf32, #tpu.memory_space<vmem>>, vector<8x128xf32>,
    %c0_14 = arith.constant 0 : index
    %c0_15 = arith.constant 0 : index
    %19 = vector.load %arg5[%c0_14, %c0_15] : memref<8x32xbf16, #tpu.memory_space<vmem>>, vector<8x32xbf16>
    %c0_16 = arith.constant 0 : index
    %c127 = arith.constant 127 : index
    %20 = vector.load %arg14[%c0_16, %c127] : memref<8x384xf32, #tpu.memory_space<vmem>>, vector<8x128xf32>
    %c0_17 = arith.constant 0 : index
    %c128_18 = arith.constant 128 : index
    %21 = vector.load %arg14[%c0_17, %c128_18] : memref<8x384xf32, #tpu.memory_space<vmem>>, vector<8x128xf32>
    %c0_19 = arith.constant 0 : index
    %c129 = arith.constant 129 : index
    %22 = vector.load %arg14[%c0_19, %c129] : memref<8x384xf32, #tpu.memory_space<vmem>>, vector<8x128xf32>
    %c0_20 = arith.constant 0 : index
    %c130 = arith.constant 130 : index
    %23 = vector.load %arg14[%c0_20, %c130] : memref<8x384xf32, #tpu.memory_space<vmem>>, vector<8x128xf32>
    %24 = tpu.concatenate %20, %21, %22, %23 in 0 : vector<8x128xf32>, vector<8x128xf32>, vector<8x128xf32>, vector<8x128xf32> -> vector<32x128xf32>
    %25 = arith.truncf %24 : vector<32x128xf32> to vector<32x128xbf16>
    %cst_21 = arith.constant dense<0.000000e+00> : vector<8x128xf32>
    %26 = tpu.matmul %19, %25, %cst_21 {dimension_numbers = #tpu.dot_dimension_numbers<[1], [0], [0], [1], [0, 0, 1, 1], [], []>} : vector<8x32xbf16>, vector<32x128xbf16>, vector<8x128xf32> -> vector<8x128xf32>
    %c0_22 = arith.constant 0 : index
    %c0_23 = arith.constant 0 : index
    %c0_24 = arith.constant 0 : index
    %c0_25 = arith.constant 0 : index
    %27 = vector.load %arg6[%c0_22, %c0_23, %c0_24, %c0_25] : memref<3x2x8x1xf32, #tpu.memory_space<vmem>>, vector<1x1x8x1xf32>
    %28 = vector.shape_cast %27 : vector<1x1x8x1xf32> to vector<8x1xf32>
    %c0_26 = arith.constant 0 : index
    %c0_27 = arith.constant 0 : index
    %c0_28 = arith.constant 0 : index
    %c0_29 = arith.constant 0 : index
    %29 = vector.load %arg7[%c0_26, %c0_27, %c0_28, %c0_29] : memref<3x2x8x1xf32, #tpu.memory_space<vmem>>, vector<1x1x8x1xf32>
    %30 = vector.shape_cast %29 : vector<1x1x8x1xf32> to vector<8x1xf32>
    %31 = vector.broadcast %28 : vector<8x1xf32> to vector<8x128xf32>
    %32 = arith.mulf %31, %26 : vector<8x128xf32>
    %33 = math.sin %32 : vector<8x128xf32>
    %34 = arith.mulf %33, %33 : vector<8x128xf32>
    %35 = vector.broadcast %30 : vector<8x1xf32> to vector<8x128xf32>
    %36 = arith.mulf %34, %35 : vector<8x128xf32>
    %37 = arith.addf %26, %36 : vector<8x128xf32>
    %c0_30 = arith.constant 0 : index
    %c128_31 = arith.constant 128 : index
    %38 = vector.load %arg14[%c0_30, %c128_31] : memref<8x384xf32, #tpu.memory_space<vmem>>, vector<8x128xf32>
    tpu.vector_store %arg14[%c0_30, %c128_31], %37 {strides = array<i32>} : memref<8x384xf32, #tpu.memory_space<vmem>>, vector<8x128xf32>,
    %c0_32 = arith.constant 0 : index
    %c0_33 = arith.constant 0 : index
    %c0_34 = arith.constant 0 : index
    %39 = vector.load %arg8[%c0_32, %c0_33, %c0_34] : memref<3x8x56xbf16, #tpu.memory_space<vmem>>, vector<1x8x56xbf16>
    %40 = vector.shape_cast %39 : vector<1x8x56xbf16> to vector<8x56xbf16>
    %c0_35 = arith.constant 0 : index
    %c0_36 = arith.constant 0 : index
    %c0_37 = arith.constant 0 : index
    %41 = vector.load %arg9[%c0_35, %c0_36, %c0_37] : memref<3x8x1xf32, #tpu.memory_space<vmem>>, vector<1x8x1xf32>
    %42 = vector.shape_cast %41 : vector<1x8x1xf32> to vector<8x1xf32>
    %c0_38 = arith.constant 0 : index
    %c125 = arith.constant 125 : index
    %43 = vector.load %arg14[%c0_38, %c125] : memref<8x384xf32, #tpu.memory_space<vmem>>, vector<8x128xf32>
    %c0_39 = arith.constant 0 : index
    %c126 = arith.constant 126 : index
    %44 = vector.load %arg14[%c0_39, %c126] : memref<8x384xf32, #tpu.memory_space<vmem>>, vector<8x128xf32>
    %c0_40 = arith.constant 0 : index
    %c127_41 = arith.constant 127 : index
    %45 = vector.load %arg14[%c0_40, %c127_41] : memref<8x384xf32, #tpu.memory_space<vmem>>, vector<8x128xf32>
    %c0_42 = arith.constant 0 : index
    %c128_43 = arith.constant 128 : index
    %46 = vector.load %arg14[%c0_42, %c128_43] : memref<8x384xf32, #tpu.memory_space<vmem>>, vector<8x128xf32>
    %c0_44 = arith.constant 0 : index
    %c129_45 = arith.constant 129 : index
    %47 = vector.load %arg14[%c0_44, %c129_45] : memref<8x384xf32, #tpu.memory_space<vmem>>, vector<8x128xf32>
    %c0_46 = arith.constant 0 : index
    %c130_47 = arith.constant 130 : index
    %48 = vector.load %arg14[%c0_46, %c130_47] : memref<8x384xf32, #tpu.memory_space<vmem>>, vector<8x128xf32>
    %c0_48 = arith.constant 0 : index
    %c131 = arith.constant 131 : index
    %49 = vector.load %arg14[%c0_48, %c131] : memref<8x384xf32, #tpu.memory_space<vmem>>, vector<8x128xf32>
    %50 = tpu.concatenate %43, %44, %45, %46, %47, %48, %49 in 0 : vector<8x128xf32>, vector<8x128xf32>, vector<8x128xf32>, vector<8x128xf32>, vector<8x128xf32>, vector<8x128xf32>, vector<8x128xf32> -> vector<56x128xf32>
    %51 = arith.truncf %50 : vector<56x128xf32> to vector<56x128xbf16>
    %cst_49 = arith.constant dense<0.000000e+00> : vector<8x128xf32>
    %52 = tpu.matmul %40, %51, %cst_49 {dimension_numbers = #tpu.dot_dimension_numbers<[1], [0], [0], [1], [0, 0, 1, 1], [], []>} : vector<8x56xbf16>, vector<56x128xbf16>, vector<8x128xf32> -> vector<8x128xf32>
    %53 = vector.broadcast %42 : vector<8x1xf32> to vector<8x128xf32>
    %54 = arith.addf %52, %53 : vector<8x128xf32>
    %c0_50 = arith.constant 0 : index
    %c1 = arith.constant 1 : index
    %c0_51 = arith.constant 0 : index
    %c0_52 = arith.constant 0 : index
    %55 = vector.load %arg6[%c0_50, %c1, %c0_51, %c0_52] : memref<3x2x8x1xf32, #tpu.memory_space<vmem>>, vector<1x1x8x1xf32>
    %56 = vector.shape_cast %55 : vector<1x1x8x1xf32> to vector<8x1xf32>
    %c0_53 = arith.constant 0 : index
    %c1_54 = arith.constant 1 : index
    %c0_55 = arith.constant 0 : index
    %c0_56 = arith.constant 0 : index
    %57 = vector.load %arg7[%c0_53, %c1_54, %c0_55, %c0_56] : memref<3x2x8x1xf32, #tpu.memory_space<vmem>>, vector<1x1x8x1xf32>
    %58 = vector.shape_cast %57 : vector<1x1x8x1xf32> to vector<8x1xf32>
    %59 = vector.broadcast %56 : vector<8x1xf32> to vector<8x128xf32>
    %60 = arith.mulf %59, %54 : vector<8x128xf32>
    %61 = math.sin %60 : vector<8x128xf32>
    %62 = arith.mulf %61, %61 : vector<8x128xf32>
    %63 = vector.broadcast %58 : vector<8x1xf32> to vector<8x128xf32>
    %64 = arith.mulf %62, %63 : vector<8x128xf32>
    %65 = arith.addf %54, %64 : vector<8x128xf32>
    %c0_57 = arith.constant 0 : index
    %c0_58 = arith.constant 0 : index
    %c0_59 = arith.constant 0 : index
    %66 = vector.load %arg10[%c0_57, %c0_58, %c0_59] : memref<3x8x8xbf16, #tpu.memory_space<vmem>>, vector<1x8x8xbf16>
    %67 = vector.shape_cast %66 : vector<1x8x8xbf16> to vector<8x8xbf16>
    %68 = arith.truncf %65 : vector<8x128xf32> to vector<8x128xbf16>
    %cst_60 = arith.constant dense<0.000000e+00> : vector<8x128xf32>
    %69 = tpu.matmul %67, %68, %cst_60 {dimension_numbers = #tpu.dot_dimension_numbers<[1], [0], [0], [1], [0, 0, 1, 1], [], []>} : vector<8x8xbf16>, vector<8x128xbf16>, vector<8x128xf32> -> vector<8x128xf32>
    %c0_61 = arith.constant 0 : index
    %c0_62 = arith.constant 0 : index
    %c0_63 = arith.constant 0 : index
    %70 = vector.load %arg11[%c0_61, %c0_62, %c0_63] : memref<3x8x1xf32, #tpu.memory_space<vmem>>, vector<1x8x1xf32>
    %71 = vector.shape_cast %70 : vector<1x8x1xf32> to vector<8x1xf32>
    %72 = vector.broadcast %71 : vector<8x1xf32> to vector<8x128xf32>
    %73 = arith.addf %69, %72 : vector<8x128xf32>
    %c0_64 = arith.constant 0 : index
    %c0_65 = arith.constant 0 : index
    %c0_66 = arith.constant 0 : index
    %c0_67 = arith.constant 0 : index
    %74 = vector.load %arg12[%c0_64, %c0_65, %c0_66, %c0_67] : memref<3x2x1x1xf32, #tpu.memory_space<vmem>>, vector<1x1x1x1xf32>
    %75 = vector.shape_cast %74 : vector<1x1x1x1xf32> to vector<1x1xf32>
    %76 = vector.broadcast %75 : vector<1x1xf32> to vector<8x128xf32>
    %77 = arith.mulf %76, %26 : vector<8x128xf32>
    %c0_68 = arith.constant 0 : index
    %c1_69 = arith.constant 1 : index
    %c0_70 = arith.constant 0 : index
    %c0_71 = arith.constant 0 : index
    %78 = vector.load %arg12[%c0_68, %c1_69, %c0_70, %c0_71] : memref<3x2x1x1xf32, #tpu.memory_space<vmem>>, vector<1x1x1x1xf32>
    %79 = vector.shape_cast %78 : vector<1x1x1x1xf32> to vector<1x1xf32>
    %80 = vector.broadcast %79 : vector<1x1xf32> to vector<8x128xf32>
    %81 = arith.mulf %80, %73 : vector<8x128xf32>
    %82 = arith.addf %77, %81 : vector<8x128xf32>
    %c1_72 = arith.constant 1 : index
    %c0_73 = arith.constant 0 : index
    %c0_74 = arith.constant 0 : index
    %c0_75 = arith.constant 0 : index
    %83 = vector.load %arg6[%c1_72, %c0_73, %c0_74, %c0_75] : memref<3x2x8x1xf32, #tpu.memory_space<vmem>>, vector<1x1x8x1xf32>
    %84 = vector.shape_cast %83 : vector<1x1x8x1xf32> to vector<8x1xf32>
    %c1_76 = arith.constant 1 : index
    %c0_77 = arith.constant 0 : index
    %c0_78 = arith.constant 0 : index
    %c0_79 = arith.constant 0 : index
    %85 = vector.load %arg7[%c1_76, %c0_77, %c0_78, %c0_79] : memref<3x2x8x1xf32, #tpu.memory_space<vmem>>, vector<1x1x8x1xf32>
    %86 = vector.shape_cast %85 : vector<1x1x8x1xf32> to vector<8x1xf32>
    %87 = vector.broadcast %84 : vector<8x1xf32> to vector<8x128xf32>
    %88 = arith.mulf %87, %82 : vector<8x128xf32>
    %89 = math.sin %88 : vector<8x128xf32>
    %90 = arith.mulf %89, %89 : vector<8x128xf32>
    %91 = vector.broadcast %86 : vector<8x1xf32> to vector<8x128xf32>
    %92 = arith.mulf %90, %91 : vector<8x128xf32>
    %93 = arith.addf %82, %92 : vector<8x128xf32>
    %c0_80 = arith.constant 0 : index
    %c128_81 = arith.constant 128 : index
    %94 = vector.load %arg14[%c0_80, %c128_81] : memref<8x384xf32, #tpu.memory_space<vmem>>, vector<8x128xf32>
    tpu.vector_store %arg14[%c0_80, %c128_81], %93 {strides = array<i32>} : memref<8x384xf32, #tpu.memory_space<vmem>>, vector<8x128xf32>,
    %c1_82 = arith.constant 1 : index
    %c0_83 = arith.constant 0 : index
    %c0_84 = arith.constant 0 : index
    %95 = vector.load %arg8[%c1_82, %c0_83, %c0_84] : memref<3x8x56xbf16, #tpu.memory_space<vmem>>, vector<1x8x56xbf16>
    %96 = vector.shape_cast %95 : vector<1x8x56xbf16> to vector<8x56xbf16>
    %c1_85 = arith.constant 1 : index
    %c0_86 = arith.constant 0 : index
    %c0_87 = arith.constant 0 : index
    %97 = vector.load %arg9[%c1_85, %c0_86, %c0_87] : memref<3x8x1xf32, #tpu.memory_space<vmem>>, vector<1x8x1xf32>
    %98 = vector.shape_cast %97 : vector<1x8x1xf32> to vector<8x1xf32>
    %c0_88 = arith.constant 0 : index
    %c119 = arith.constant 119 : index
    %99 = vector.load %arg14[%c0_88, %c119] : memref<8x384xf32, #tpu.memory_space<vmem>>, vector<8x128xf32>
    %c0_89 = arith.constant 0 : index
    %c122 = arith.constant 122 : index
    %100 = vector.load %arg14[%c0_89, %c122] : memref<8x384xf32, #tpu.memory_space<vmem>>, vector<8x128xf32>
    %c0_90 = arith.constant 0 : index
    %c125_91 = arith.constant 125 : index
    %101 = vector.load %arg14[%c0_90, %c125_91] : memref<8x384xf32, #tpu.memory_space<vmem>>, vector<8x128xf32>
    %c0_92 = arith.constant 0 : index
    %c128_93 = arith.constant 128 : index
    %102 = vector.load %arg14[%c0_92, %c128_93] : memref<8x384xf32, #tpu.memory_space<vmem>>, vector<8x128xf32>
    %c0_94 = arith.constant 0 : index
    %c131_95 = arith.constant 131 : index
    %103 = vector.load %arg14[%c0_94, %c131_95] : memref<8x384xf32, #tpu.memory_space<vmem>>, vector<8x128xf32>
    %c0_96 = arith.constant 0 : index
    %c134 = arith.constant 134 : index
    %104 = vector.load %arg14[%c0_96, %c134] : memref<8x384xf32, #tpu.memory_space<vmem>>, vector<8x128xf32>
    %c0_97 = arith.constant 0 : index
    %c137 = arith.constant 137 : index
    %105 = vector.load %arg14[%c0_97, %c137] : memref<8x384xf32, #tpu.memory_space<vmem>>, vector<8x128xf32>
    %106 = tpu.concatenate %99, %100, %101, %102, %103, %104, %105 in 0 : vector<8x128xf32>, vector<8x128xf32>, vector<8x128xf32>, vector<8x128xf32>, vector<8x128xf32>, vector<8x128xf32>, vector<8x128xf32> -> vector<56x128xf32>
    %107 = arith.truncf %106 : vector<56x128xf32> to vector<56x128xbf16>
    %cst_98 = arith.constant dense<0.000000e+00> : vector<8x128xf32>
    %108 = tpu.matmul %96, %107, %cst_98 {dimension_numbers = #tpu.dot_dimension_numbers<[1], [0], [0], [1], [0, 0, 1, 1], [], []>} : vector<8x56xbf16>, vector<56x128xbf16>, vector<8x128xf32> -> vector<8x128xf32>
    %109 = vector.broadcast %98 : vector<8x1xf32> to vector<8x128xf32>
    %110 = arith.addf %108, %109 : vector<8x128xf32>
    %c1_99 = arith.constant 1 : index
    %c1_100 = arith.constant 1 : index
    %c0_101 = arith.constant 0 : index
    %c0_102 = arith.constant 0 : index
    %111 = vector.load %arg6[%c1_99, %c1_100, %c0_101, %c0_102] : memref<3x2x8x1xf32, #tpu.memory_space<vmem>>, vector<1x1x8x1xf32>
    %112 = vector.shape_cast %111 : vector<1x1x8x1xf32> to vector<8x1xf32>
    %c1_103 = arith.constant 1 : index
    %c1_104 = arith.constant 1 : index
    %c0_105 = arith.constant 0 : index
    %c0_106 = arith.constant 0 : index
    %113 = vector.load %arg7[%c1_103, %c1_104, %c0_105, %c0_106] : memref<3x2x8x1xf32, #tpu.memory_space<vmem>>, vector<1x1x8x1xf32>
    %114 = vector.shape_cast %113 : vector<1x1x8x1xf32> to vector<8x1xf32>
    %115 = vector.broadcast %112 : vector<8x1xf32> to vector<8x128xf32>
    %116 = arith.mulf %115, %110 : vector<8x128xf32>
    %117 = math.sin %116 : vector<8x128xf32>
    %118 = arith.mulf %117, %117 : vector<8x128xf32>
    %119 = vector.broadcast %114 : vector<8x1xf32> to vector<8x128xf32>
    %120 = arith.mulf %118, %119 : vector<8x128xf32>
    %121 = arith.addf %110, %120 : vector<8x128xf32>
    %c1_107 = arith.constant 1 : index
    %c0_108 = arith.constant 0 : index
    %c0_109 = arith.constant 0 : index
    %122 = vector.load %arg10[%c1_107, %c0_108, %c0_109] : memref<3x8x8xbf16, #tpu.memory_space<vmem>>, vector<1x8x8xbf16>
    %123 = vector.shape_cast %122 : vector<1x8x8xbf16> to vector<8x8xbf16>
    %124 = arith.truncf %121 : vector<8x128xf32> to vector<8x128xbf16>
    %cst_110 = arith.constant dense<0.000000e+00> : vector<8x128xf32>
    %125 = tpu.matmul %123, %124, %cst_110 {dimension_numbers = #tpu.dot_dimension_numbers<[1], [0], [0], [1], [0, 0, 1, 1], [], []>} : vector<8x8xbf16>, vector<8x128xbf16>, vector<8x128xf32> -> vector<8x128xf32>
    %c1_111 = arith.constant 1 : index
    %c0_112 = arith.constant 0 : index
    %c0_113 = arith.constant 0 : index
    %126 = vector.load %arg11[%c1_111, %c0_112, %c0_113] : memref<3x8x1xf32, #tpu.memory_space<vmem>>, vector<1x8x1xf32>
    %127 = vector.shape_cast %126 : vector<1x8x1xf32> to vector<8x1xf32>
    %128 = vector.broadcast %127 : vector<8x1xf32> to vector<8x128xf32>
    %129 = arith.addf %125, %128 : vector<8x128xf32>
    %c1_114 = arith.constant 1 : index
    %c0_115 = arith.constant 0 : index
    %c0_116 = arith.constant 0 : index
    %c0_117 = arith.constant 0 : index
    %130 = vector.load %arg12[%c1_114, %c0_115, %c0_116, %c0_117] : memref<3x2x1x1xf32, #tpu.memory_space<vmem>>, vector<1x1x1x1xf32>
    %131 = vector.shape_cast %130 : vector<1x1x1x1xf32> to vector<1x1xf32>
    %132 = vector.broadcast %131 : vector<1x1xf32> to vector<8x128xf32>
    %133 = arith.mulf %132, %82 : vector<8x128xf32>
    %c1_118 = arith.constant 1 : index
    %c1_119 = arith.constant 1 : index
    %c0_120 = arith.constant 0 : index
    %c0_121 = arith.constant 0 : index
    %134 = vector.load %arg12[%c1_118, %c1_119, %c0_120, %c0_121] : memref<3x2x1x1xf32, #tpu.memory_space<vmem>>, vector<1x1x1x1xf32>
    %135 = vector.shape_cast %134 : vector<1x1x1x1xf32> to vector<1x1xf32>
    %136 = vector.broadcast %135 : vector<1x1xf32> to vector<8x128xf32>
    %137 = arith.mulf %136, %129 : vector<8x128xf32>
    %138 = arith.addf %133, %137 : vector<8x128xf32>
    %c2 = arith.constant 2 : index
    %c0_122 = arith.constant 0 : index
    %c0_123 = arith.constant 0 : index
    %c0_124 = arith.constant 0 : index
    %139 = vector.load %arg6[%c2, %c0_122, %c0_123, %c0_124] : memref<3x2x8x1xf32, #tpu.memory_space<vmem>>, vector<1x1x8x1xf32>
    %140 = vector.shape_cast %139 : vector<1x1x8x1xf32> to vector<8x1xf32>
    %c2_125 = arith.constant 2 : index
    %c0_126 = arith.constant 0 : index
    %c0_127 = arith.constant 0 : index
    %c0_128 = arith.constant 0 : index
    %141 = vector.load %arg7[%c2_125, %c0_126, %c0_127, %c0_128] : memref<3x2x8x1xf32, #tpu.memory_space<vmem>>, vector<1x1x8x1xf32>
    %142 = vector.shape_cast %141 : vector<1x1x8x1xf32> to vector<8x1xf32>
    %143 = vector.broadcast %140 : vector<8x1xf32> to vector<8x128xf32>
    %144 = arith.mulf %143, %138 : vector<8x128xf32>
    %145 = math.sin %144 : vector<8x128xf32>
    %146 = arith.mulf %145, %145 : vector<8x128xf32>
    %147 = vector.broadcast %142 : vector<8x1xf32> to vector<8x128xf32>
    %148 = arith.mulf %146, %147 : vector<8x128xf32>
    %149 = arith.addf %138, %148 : vector<8x128xf32>
    %c0_129 = arith.constant 0 : index
    %c128_130 = arith.constant 128 : index
    %150 = vector.load %arg14[%c0_129, %c128_130] : memref<8x384xf32, #tpu.memory_space<vmem>>, vector<8x128xf32>
    tpu.vector_store %arg14[%c0_129, %c128_130], %149 {strides = array<i32>} : memref<8x384xf32, #tpu.memory_space<vmem>>, vector<8x128xf32>,
    %c2_131 = arith.constant 2 : index
    %c0_132 = arith.constant 0 : index
    %c0_133 = arith.constant 0 : index
    %151 = vector.load %arg8[%c2_131, %c0_132, %c0_133] : memref<3x8x56xbf16, #tpu.memory_space<vmem>>, vector<1x8x56xbf16>
    %152 = vector.shape_cast %151 : vector<1x8x56xbf16> to vector<8x56xbf16>
    %c2_134 = arith.constant 2 : index
    %c0_135 = arith.constant 0 : index
    %c0_136 = arith.constant 0 : index
    %153 = vector.load %arg9[%c2_134, %c0_135, %c0_136] : memref<3x8x1xf32, #tpu.memory_space<vmem>>, vector<1x8x1xf32>
    %154 = vector.shape_cast %153 : vector<1x8x1xf32> to vector<8x1xf32>
    %c0_137 = arith.constant 0 : index
    %c101 = arith.constant 101 : index
    %155 = vector.load %arg14[%c0_137, %c101] : memref<8x384xf32, #tpu.memory_space<vmem>>, vector<8x128xf32>
    %c0_138 = arith.constant 0 : index
    %c110 = arith.constant 110 : index
    %156 = vector.load %arg14[%c0_138, %c110] : memref<8x384xf32, #tpu.memory_space<vmem>>, vector<8x128xf32>
    %c0_139 = arith.constant 0 : index
    %c119_140 = arith.constant 119 : index
    %157 = vector.load %arg14[%c0_139, %c119_140] : memref<8x384xf32, #tpu.memory_space<vmem>>, vector<8x128xf32>
    %c0_141 = arith.constant 0 : index
    %c128_142 = arith.constant 128 : index
    %158 = vector.load %arg14[%c0_141, %c128_142] : memref<8x384xf32, #tpu.memory_space<vmem>>, vector<8x128xf32>
    %c0_143 = arith.constant 0 : index
    %c137_144 = arith.constant 137 : index
    %159 = vector.load %arg14[%c0_143, %c137_144] : memref<8x384xf32, #tpu.memory_space<vmem>>, vector<8x128xf32>
    %c0_145 = arith.constant 0 : index
    %c146 = arith.constant 146 : index
    %160 = vector.load %arg14[%c0_145, %c146] : memref<8x384xf32, #tpu.memory_space<vmem>>, vector<8x128xf32>
    %c0_146 = arith.constant 0 : index
    %c155 = arith.constant 155 : index
    %161 = vector.load %arg14[%c0_146, %c155] : memref<8x384xf32, #tpu.memory_space<vmem>>, vector<8x128xf32>
    %162 = tpu.concatenate %155, %156, %157, %158, %159, %160, %161 in 0 : vector<8x128xf32>, vector<8x128xf32>, vector<8x128xf32>, vector<8x128xf32>, vector<8x128xf32>, vector<8x128xf32>, vector<8x128xf32> -> vector<56x128xf32>
    %163 = arith.truncf %162 : vector<56x128xf32> to vector<56x128xbf16>
    %cst_147 = arith.constant dense<0.000000e+00> : vector<8x128xf32>
    %164 = tpu.matmul %152, %163, %cst_147 {dimension_numbers = #tpu.dot_dimension_numbers<[1], [0], [0], [1], [0, 0, 1, 1], [], []>} : vector<8x56xbf16>, vector<56x128xbf16>, vector<8x128xf32> -> vector<8x128xf32>
    %165 = vector.broadcast %154 : vector<8x1xf32> to vector<8x128xf32>
    %166 = arith.addf %164, %165 : vector<8x128xf32>
    %c2_148 = arith.constant 2 : index
    %c1_149 = arith.constant 1 : index
    %c0_150 = arith.constant 0 : index
    %c0_151 = arith.constant 0 : index
    %167 = vector.load %arg6[%c2_148, %c1_149, %c0_150, %c0_151] : memref<3x2x8x1xf32, #tpu.memory_space<vmem>>, vector<1x1x8x1xf32>
    %168 = vector.shape_cast %167 : vector<1x1x8x1xf32> to vector<8x1xf32>
    %c2_152 = arith.constant 2 : index
    %c1_153 = arith.constant 1 : index
    %c0_154 = arith.constant 0 : index
    %c0_155 = arith.constant 0 : index
    %169 = vector.load %arg7[%c2_152, %c1_153, %c0_154, %c0_155] : memref<3x2x8x1xf32, #tpu.memory_space<vmem>>, vector<1x1x8x1xf32>
    %170 = vector.shape_cast %169 : vector<1x1x8x1xf32> to vector<8x1xf32>
    %171 = vector.broadcast %168 : vector<8x1xf32> to vector<8x128xf32>
    %172 = arith.mulf %171, %166 : vector<8x128xf32>
    %173 = math.sin %172 : vector<8x128xf32>
    %174 = arith.mulf %173, %173 : vector<8x128xf32>
    %175 = vector.broadcast %170 : vector<8x1xf32> to vector<8x128xf32>
    %176 = arith.mulf %174, %175 : vector<8x128xf32>
    %177 = arith.addf %166, %176 : vector<8x128xf32>
    %c2_156 = arith.constant 2 : index
    %c0_157 = arith.constant 0 : index
    %c0_158 = arith.constant 0 : index
    %178 = vector.load %arg10[%c2_156, %c0_157, %c0_158] : memref<3x8x8xbf16, #tpu.memory_space<vmem>>, vector<1x8x8xbf16>
    %179 = vector.shape_cast %178 : vector<1x8x8xbf16> to vector<8x8xbf16>
    %180 = arith.truncf %177 : vector<8x128xf32> to vector<8x128xbf16>
    %cst_159 = arith.constant dense<0.000000e+00> : vector<8x128xf32>
    %181 = tpu.matmul %179, %180, %cst_159 {dimension_numbers = #tpu.dot_dimension_numbers<[1], [0], [0], [1], [0, 0, 1, 1], [], []>} : vector<8x8xbf16>, vector<8x128xbf16>, vector<8x128xf32> -> vector<8x128xf32>
    %c2_160 = arith.constant 2 : index
    %c0_161 = arith.constant 0 : index
    %c0_162 = arith.constant 0 : index
    %182 = vector.load %arg11[%c2_160, %c0_161, %c0_162] : memref<3x8x1xf32, #tpu.memory_space<vmem>>, vector<1x8x1xf32>
    %183 = vector.shape_cast %182 : vector<1x8x1xf32> to vector<8x1xf32>
    %184 = vector.broadcast %183 : vector<8x1xf32> to vector<8x128xf32>
    %185 = arith.addf %181, %184 : vector<8x128xf32>
    %c2_163 = arith.constant 2 : index
    %c0_164 = arith.constant 0 : index
    %c0_165 = arith.constant 0 : index
    %c0_166 = arith.constant 0 : index
    %186 = vector.load %arg12[%c2_163, %c0_164, %c0_165, %c0_166] : memref<3x2x1x1xf32, #tpu.memory_space<vmem>>, vector<1x1x1x1xf32>
    %187 = vector.shape_cast %186 : vector<1x1x1x1xf32> to vector<1x1xf32>
    %188 = vector.broadcast %187 : vector<1x1xf32> to vector<8x128xf32>
    %189 = arith.mulf %188, %138 : vector<8x128xf32>
    %c2_167 = arith.constant 2 : index
    %c1_168 = arith.constant 1 : index
    %c0_169 = arith.constant 0 : index
    %c0_170 = arith.constant 0 : index
    %190 = vector.load %arg12[%c2_167, %c1_168, %c0_169, %c0_170] : memref<3x2x1x1xf32, #tpu.memory_space<vmem>>, vector<1x1x1x1xf32>
    %191 = vector.shape_cast %190 : vector<1x1x1x1xf32> to vector<1x1xf32>
    %192 = vector.broadcast %191 : vector<1x1xf32> to vector<8x128xf32>
    %193 = arith.mulf %192, %185 : vector<8x128xf32>
    %194 = arith.addf %189, %193 : vector<8x128xf32>
    %c0_171 = arith.constant 0 : index
    %c0_172 = arith.constant 0 : index
    %c0_173 = arith.constant 0 : index
    %195 = vector.load %arg13[%c0_171, %c0_172, %c0_173] : memref<1x8x128xf32, #tpu.memory_space<vmem>>, vector<1x8x128xf32>
    %196 = vector.shape_cast %195 : vector<1x8x128xf32> to vector<8x128xf32>
    %197 = vector.shape_cast %194 : vector<8x128xf32> to vector<1x8x128xf32>
    tpu.vector_store %arg13[%c0_171, %c0_172, %c0_173], %197 {strides = array<i32>} : memref<1x8x128xf32, #tpu.memory_space<vmem>>, vector<1x8x128xf32>,
    return
  }
  func.func @transform_0(%arg0: i32) -> (i32, i32, i32) {
    %c0_i32 = arith.constant 0 : i32
    %c0_i32_0 = arith.constant 0 : i32
    %c0_i32_1 = arith.constant 0 : i32
    return %arg0, %c0_i32, %c0_i32_0 : i32, i32, i32
  }
  func.func @transform_1(%arg0: i32) -> (i32, i32) {
    %c0_i32 = arith.constant 0 : i32
    %c0_i32_0 = arith.constant 0 : i32
    %c0_i32_1 = arith.constant 0 : i32
    return %c0_i32, %c0_i32_0 : i32, i32
  }
  func.func @transform_2(%arg0: i32) -> (i32, i32) {
    %c0_i32 = arith.constant 0 : i32
    %c0_i32_0 = arith.constant 0 : i32
    %c0_i32_1 = arith.constant 0 : i32
    return %c0_i32, %c0_i32_0 : i32, i32
  }
  func.func @transform_3(%arg0: i32) -> (i32, i32) {
    %c0_i32 = arith.constant 0 : i32
    %c0_i32_0 = arith.constant 0 : i32
    %c0_i32_1 = arith.constant 0 : i32
    return %c0_i32, %c0_i32_0 : i32, i32
  }
  func.func @transform_4(%arg0: i32) -> (i32, i32) {
    %c0_i32 = arith.constant 0 : i32
    %c0_i32_0 = arith.constant 0 : i32
    %c0_i32_1 = arith.constant 0 : i32
    return %c0_i32, %c0_i32_0 : i32, i32
  }
  func.func @transform_5(%arg0: i32) -> (i32, i32, i32, i32) {
    %c0_i32 = arith.constant 0 : i32
    %c0_i32_0 = arith.constant 0 : i32
    %c0_i32_1 = arith.constant 0 : i32
    %c0_i32_2 = arith.constant 0 : i32
    %c0_i32_3 = arith.constant 0 : i32
    return %c0_i32, %c0_i32_0, %c0_i32_1, %c0_i32_2 : i32, i32, i32, i32
  }
  func.func @transform_6(%arg0: i32) -> (i32, i32, i32, i32) {
    %c0_i32 = arith.constant 0 : i32
    %c0_i32_0 = arith.constant 0 : i32
    %c0_i32_1 = arith.constant 0 : i32
    %c0_i32_2 = arith.constant 0 : i32
    %c0_i32_3 = arith.constant 0 : i32
    return %c0_i32, %c0_i32_0, %c0_i32_1, %c0_i32_2 : i32, i32, i32, i32
  }
  func.func @transform_7(%arg0: i32) -> (i32, i32, i32) {
    %c0_i32 = arith.constant 0 : i32
    %c0_i32_0 = arith.constant 0 : i32
    %c0_i32_1 = arith.constant 0 : i32
    %c0_i32_2 = arith.constant 0 : i32
    return %c0_i32, %c0_i32_0, %c0_i32_1 : i32, i32, i32
  }
  func.func @transform_8(%arg0: i32) -> (i32, i32, i32) {
    %c0_i32 = arith.constant 0 : i32
    %c0_i32_0 = arith.constant 0 : i32
    %c0_i32_1 = arith.constant 0 : i32
    %c0_i32_2 = arith.constant 0 : i32
    return %c0_i32, %c0_i32_0, %c0_i32_1 : i32, i32, i32
  }
  func.func @transform_9(%arg0: i32) -> (i32, i32, i32) {
    %c0_i32 = arith.constant 0 : i32
    %c0_i32_0 = arith.constant 0 : i32
    %c0_i32_1 = arith.constant 0 : i32
    %c0_i32_2 = arith.constant 0 : i32
    return %c0_i32, %c0_i32_0, %c0_i32_1 : i32, i32, i32
  }
  func.func @transform_10(%arg0: i32) -> (i32, i32, i32) {
    %c0_i32 = arith.constant 0 : i32
    %c0_i32_0 = arith.constant 0 : i32
    %c0_i32_1 = arith.constant 0 : i32
    %c0_i32_2 = arith.constant 0 : i32
    return %c0_i32, %c0_i32_0, %c0_i32_1 : i32, i32, i32
  }
  func.func @transform_11(%arg0: i32) -> (i32, i32, i32, i32) {
    %c0_i32 = arith.constant 0 : i32
    %c0_i32_0 = arith.constant 0 : i32
    %c0_i32_1 = arith.constant 0 : i32
    %c0_i32_2 = arith.constant 0 : i32
    %c0_i32_3 = arith.constant 0 : i32
    return %c0_i32, %c0_i32_0, %c0_i32_1, %c0_i32_2 : i32, i32, i32, i32
  }
  func.func @transform_12(%arg0: i32) -> (i32, i32, i32) {
    %c0_i32 = arith.constant 0 : i32
    %c0_i32_0 = arith.constant 0 : i32
    %c0_i32_1 = arith.constant 0 : i32
    return %arg0, %c0_i32, %c0_i32_0 : i32, i32, i32
  }
}

</mosaic_0001>

<bundles_post_ra>
// kernel: decoder_block_forward.1
= control target key start
LH: loop header
LB: loop body
LE: loop exit
PB: predicated region body
PF: predicated region fallthrough
CT: control target
= control target key end

     0   :  { %s3296_s0 = inlined_call_operand.vmem [shape: f32[2,8,64], index: 0, kind: input, shape index: {}]   ;;  %s3297_s1 = inlined_call_operand.vmem [shape: bf16[64,128], index: 1, kind: input, shape index: {}]   ;;  %s3298_s2 = inlined_call_operand.vmem [shape: f32[8,1], index: 2, kind: input, shape index: {}]   ;;  %s3299_s3 = inlined_call_operand.vmem [shape: f32[8,1], index: 3, kind: input, shape index: {}]   ;;  %s3300_s4 = inlined_call_operand.vmem [shape: bf16[8,32], index: 4, kind: input, shape index: {}]   ;;  %s3301_s5 = inlined_call_operand.vmem [shape: f32[3,2,8,1], index: 5, kind: input, shape index: {}]   ;;  %s3302_s6 = inlined_call_operand.vmem [shape: f32[3,2,8,1], index: 6, kind: input, shape index: {}]   ;;  %s3303_s7 = inlined_call_operand.vmem [shape: bf16[3,8,56], index: 7, kind: input, shape index: {}]   ;;  %s3304_s8 = inlined_call_operand.vmem [shape: f32[3,8,1], index: 8, kind: input, shape index: {}]   ;;  %s3305_s9 = inlined_call_operand.vmem [shape: bf16[3,8,8], index: 9, kind: input, shape index: {}]   ;;  %s3306_s10 = inlined_call_operand.vmem [shape: f32[3,8,1], index: 10, kind: input, shape index: {}]   ;;  %s3307_s11 = inlined_call_operand.vmem [shape: f32[3,2,1,1], index: 11, kind: input, shape index: {}]   ;;  %s3308_s12 = inlined_call_operand.hbm [shape: f32[2,8,128], index: 12, kind: output, shape index: {}]  }
   0x1   :  { %3313 = sst [smem:[#allocation6_spill]] %s3296_s0 }
   0x2   :  { %3314 = sst [smem:[#allocation7_spill]] %s3297_s1 }
   0x3   :  { %17 = vsyncpa [#allocation4], 0 }
   0x4   :  { %19 = vsyncpa [#allocation4 + $0x1], 0  ;;  %s2737_s21 = smov 0   ;;  %s2739_s22 = smov 0  }
   0x5   :  { %s2741_s23 = smov 0   ;;  %s2743_s24 = smov 0  }
   0x6 LB: > { %s2758_s25 = sadd.s32 4294967295, %s2642_s24   ;;  %s2185_s26 = sadd.s32 4294967294, %s2642_s24   ;;  %s2642_s24 = sphi %s2743_s24, %s3326_s24   ;;  %s2638_s23 = sphi %s2741_s23, %s3325_s23   ;;  %s2634_s22 = sphi %s2739_s22, %s3324_s22   ;;  %s2630_s21 = sphi %s2737_s21, %s3323_s21  }
   0x7   : > { %s2762_s27 = sadd.s32 1, %s2642_s24   ;;  %s289_s28 = sadd.s32 1, %s2638_s23 }
   0x8   : > { %s286_s29 = ssub.s32 %s2642_s24, %s2762_s27  ;;  %p299_p0 = scmp.ne.s32.totalorder %s2638_s23, %s2634_s22 }
   0x9   : > { %p287_p1 = scmp.eq.s32.totalorder %s286_s29, 0  ;;  %p300_p2 = scmp.eq.s32.totalorder %s2758_s25, 1 }
   0xa   : > { %p305_p3 = scmp.ne.s32.totalorder %s2634_s22, %s2630_s21  ;;  %p306_p4 = scmp.eq.s32.totalorder %s2185_s26, 1 }
   0xb   : > { %s2773_s30 = scalar_select %p287_p1, %s2638_s23, %s289_s28  }
   0xc   : > { %p2775_p5 = por %p300_p2, %p299_p0  ;;  %p2779_p6 = por %p306_p4, %p305_p3 }
   0xd   : > { %p2188_p7 = scmp.ge.s32.totalorder %s2642_s24, 1  ;;  %p364_p8 = scmp.lt.s32.totalorder %s2642_s24, 3 }
   0xf   : > { %p365_p9 = pnand %p2188_p7, %p364_p8 }
  0x10   : > { %v421_v0 = vld [vmem:[%s3298_s2] sm:$0xff] (!%p365_p9)  ;;  %v2644_v1 = vmov (!%p365_p9), 0   ;;  %s3317_s1 = sld [smem:[#allocation7_spill]] (!%p365_p9)  ;;  %v2645_v4 = vmov (!%p365_p9), 0.0   ;;  %vm2646_vm0 = vmmov (!%p365_p9), 0   ;;  %p405_p10 = scmp.lt.s32.totalorder (!%p365_p9), %s2758_s25, 1 }
  0x11   : > { %368 = sbr.rel (%p365_p9) target bundleno = 3514 (0xdba), region = 68  ;;  %2461 = vset.pattern.permute.xlu0 (!%p365_p9), %v2644_v1  ;;  %2472 = vset.pattern.permute.xlu1 (!%p365_p9), %v2644_v1  ;;  %v422_v2 = vld [vmem:[%s3299_s3] sm:$0xff] (!%p365_p9)  ;;  %s3318_s0 = sld [smem:[#allocation6_spill]] (!%p365_p9)  ;;  %v2647_v21 = vmov (!%p365_p9), 683565275   ;;  %vm566_vm14 = vcmask (!%p365_p9), 523264  }
  0x12   : > { %425 = vperm.xlu0 (!%p365_p9), %2461, %v421_v0   ;;  %2293 = vmatprep.subr.bf16.mxu0 (!%p365_p9), %v2645_v4  ;;  %v2648_v23 = vmov (!%p365_p9), 2475754826   ;;  %v2649_v26 = vmov (!%p365_p9), 2131351028   ;;  %v2650_v29 = vmov (!%p365_p9), 2102212464  }
  0x13   : > { %2305 = vmatprep.subr.bf16.mxu1 (!%p365_p9), %v2645_v4  ;;  %2301 = vmatprep.mubr.msk.bf16.mxu0 (!%p365_p9), %vm2646_vm0, %v2645_v4  ;;  %v2651_v32 = vmov (!%p365_p9), 920167782   ;;  %v2652_v35 = vmov (!%p365_p9), 1326507024   ;;  %s2653_s29 = smov (!%p365_p9), 127   ;;  %s3309_s15 = smov (!%p365_p9), 125  }
  0x14   : > { %2309 = vmatprep.mubr.msk.bf16.mxu1 (!%p365_p9), %vm2646_vm0, %v2645_v4  ;;  %s2655_s16 = smov (!%p365_p9), 126   ;;  %s2656_s17 = smov (!%p365_p9), 1   ;;  %vm626_vm15 = vcmask (!%p365_p9), 1031168  }
  0x15   : > { %s2659_s20 = smov (!%p365_p9), 123   ;;  %s3320_s26 = smov (!%p365_p9), 125  }
  0x16   : > { %536 = vperm.xlu0 (!%p365_p9), %2461, %v422_v2   ;;  %v2548_v3 = vld [vmem:[%s3317_s1] sm:$0xff] (!%p365_p9)   ;;  %v2549_v5 = vld [vmem:[%s3317_s1 + $0x8] sm:$0xff] (!%p365_p9)   ;;  %v2550_v6 = vld [vmem:[%s3317_s1 + $0x10] sm:$0xff] (!%p365_p9)  }
  0x17   : > { %2294 = vmatpush3.bf16.msra.mxu0 (!%p365_p9), %v2548_v3  ;;  %v2551_v7 = vld [vmem:[%s3317_s1 + $0x18] sm:$0xff] (!%p365_p9)  }
  0x18   : > { %2295 = vmatprep.subr.bf16.mxu0 %v2645_v4  ;;  %s406_s18 = scalar_select %p405_p10, %s2758_s25, 1 }
  0x1a   : > { %s2190_s19 = sshll.u32 %s406_s18, 3  ;;  %s2657_s18 = smov 124  }
  0x1b   : > { %2296 = vmatpush3.bf16.msra.mxu0 %v2549_v5  ;;  %s408_s28 = scalar_lea.vmem %s3318_s0, %s2190_s19  ;;  %s3310_s19 = smov 122  }
  0x1c   : > { %2297 = vmatprep.subr.bf16.mxu0 %v2645_v4  ;;  %v2818_v8 = vld [vmem:[%s408_s28] sm:$0xff]  ;;  %s2661_s28 = smov 116   ;;  %s2665_s0 = smov 9  }
  0x1f   : > { %2298 = vmatpush3.bf16.msra.mxu0 %v2550_v6 }
  0x20   : > { %2299 = vmatprep.subr.bf16.mxu0 %v2645_v4 }
  0x23   : > { %2300 = vmatpush3.bf16.msra.mxu0 %v2551_v7 }
  0x24   : > { %2325 = vmatprep.subr.bf16.mxu0 %v2645_v4 }
  0x91   : > { %v426_v9 = vpop.permute.xlu0 %425 }
  0x92   : > { %v2821_v10 = vmul.f32 %v426_v9, %v2818_v8 }
  0x94   : > { %v432_v11 = vand.u32 2139095040, %v2821_v10  ;;  %v429_v15 = vand.u32 2147483647, %v2821_v10  ;;  %vm431_vm8 = vcmp.lt.s32.totalorder %v2821_v10, 0  ;;  %vm521_vm13 = vweird.f32 %v2821_v10 }
  0x96   : > { %v433_v12 = vshrl.u32 %v432_v11, 23  ;;  %v436_v18 = vand.u32 8388607, %v429_v15  ;;  %vm430_vm9 = vcmp.le.f32.partialorder %v429_v15, 0.7853982 }
  0x98   : > { %v2191_v13 = vadd.s32 4294967169, %v433_v12  ;;  %v437_v37 = vor.u32 8388608, %v436_v18 }
  0x9a   : > { %v439_v14 = vadd.s32 1, %v2191_v13  ;;  %v477_v51 = vshll.u32 %v437_v37, 8 }
  0x9c   : > { %vm440_vm1 = vcmp.gt.s32.totalorder %v439_v14, 0 }
  0x9d   : > { %v441_v16 = vsel %vm440_vm1, %v439_v14, 0  ;;  %vm634_vm1 = vcmask 1022976  }
  0x9e   : > { %v443_v17 = vand.u32 31, %v441_v16  ;;  %v442_v20 = vshrl.u32 %v441_v16, 5 }
  0xa0   : > { %v444_v19 = vsub.s32 32, %v443_v17  ;;  %v446_v22 = vshll.u32 %v2647_v21, %v443_v17  ;;  %v449_v24 = vshll.u32 %v2648_v23, %v443_v17  ;;  %v452_v28 = vshll.u32 %v2649_v26, %v443_v17 }
  0xa1   : > { %v455_v31 = vshll.u32 %v2650_v29, %v443_v17  ;;  %v458_v34 = vshll.u32 %v2651_v32, %v443_v17  ;;  %vm461_vm2 = vcmp.lt.s32.totalorder %v442_v20, 1  ;;  %vm464_vm3 = vcmp.lt.s32.totalorder %v442_v20, 4 }
  0xa2   : > { %v447_v25 = vshrl.u32 %v2648_v23, %v444_v19  ;;  %v450_v27 = vshrl.u32 %v2649_v26, %v444_v19  ;;  %v453_v30 = vshrl.u32 %v2650_v29, %v444_v19  ;;  %v456_v33 = vshrl.u32 %v2651_v32, %v444_v19 }
  0xa3   : > { %v459_v36 = vshrl.u32 %v2652_v35, %v444_v19  ;;  %v445_v46 = vshrl.u32 %v2647_v21, %v444_v19  ;;  %vm463_vm4 = vcmp.lt.s32.totalorder %v442_v20, 3  ;;  %vm462_vm5 = vcmp.lt.s32.totalorder %v442_v20, 2 }
  0xa4   : > { %v448_v38 = vor.u32 %v447_v25, %v446_v22  ;;  %v451_v39 = vor.u32 %v450_v27, %v449_v24  ;;  %v454_v40 = vor.u32 %v453_v30, %v452_v28  ;;  %v457_v41 = vor.u32 %v456_v33, %v455_v31 }
  0xa5   : > { %v460_v42 = vor.u32 %v459_v36, %v458_v34 }
  0xa6   : > { %v466_v43 = vsel %vm464_vm3, %v454_v40, 2102212464  ;;  %v469_v44 = vsel %vm461_vm2, %v448_v38, %v451_v39  ;;  %v473_v45 = vsel %vm461_vm2, %v451_v39, %v454_v40  ;;  %v470_v47 = vsel %vm464_vm3, %v457_v41, 920167782 }
  0xa7   : > { %v474_v48 = vsel %vm464_vm3, %v460_v42, 1326507024  ;;  %v471_v49 = vsel %vm463_vm4, %v454_v40, %v470_v47  ;;  %v465_v52 = vsel %vm461_vm2, %v445_v46, %v448_v38  ;;  %v467_v53 = vsel %vm463_vm4, %v451_v39, %v466_v43 }
  0xa8   : > { %v475_v50 = vsel %vm463_vm4, %v457_v41, %v474_v48  ;;  %v472_v54 = vsel %vm462_vm5, %v469_v44, %v471_v49  ;;  %v468_v60 = vsel %vm462_vm5, %v465_v52, %v467_v53  ;;  %v537_v48 = vpop.permute.xlu0 %536  ;;  %vm654_vm2 = vcmask 7168  }
  0xa9   : > { %v476_v55 = vsel %vm462_vm5, %v473_v45, %v475_v50  ;;  %v2841_v58 = vmul.u32.u64.low %v477_v51, %v472_v54  ;;  %v2842_v59 = vmul.u32.u64.high %v477_v51, %v472_v54, %v2841_v58  ;;  %v484_v62 = vmul.u32 %v477_v51, %v468_v60 }
  0xaa   : > { %v2838_v56 = vmul.u32.u64.low %v477_v51, %v476_v55  ;;  %v2839_v57 = vmul.u32.u64.high %v477_v51, %v476_v55, %v2838_v56  ;;  %vm659_vm3 = vcmask 261120  }
  0xab   : > { %v487_v61 = vadd.s32 1, %v2842_v59 }
  0xac   : > { %vm486_vm6 = vc.u32 %v2839_v57, %v2841_v58  ;;  %v485_v13 = vadd.s32 %v2841_v58, %v2839_v57 }
  0xad   : > { %v488_v63 = vsel %vm486_vm6, %v487_v61, %v2842_v59 }
  0xae   : > { %v489_v0 = vadd.s32 %v488_v63, %v484_v62 }
  0xb0   : > { %v490_v1 = vadd.s32 536870912, %v489_v0 }
  0xb2   : > { %v491_v2 = vshrl.u32 %v490_v1, 30 }
  0xb4   : > { %v492_v3 = vshll.u32 %v491_v2, 30  ;;  %v515_v30 = vsub.s32 4, %v491_v2 }
  0xb6   : > { %v493_v5 = vsub.s32 %v489_v0, %v492_v3  ;;  %v516_v34 = vsel %vm431_vm8, %v515_v30, %v491_v2 }
  0xb7   : > { %v518_v37 = vsel %vm430_vm9, 0, %v516_v34 }
  0xb8   : > { %v495_v6 = vsub.s32 0, %v493_v5  ;;  %v522_v38 = vadd.s32 3, %v518_v37 }
  0xba   : > { %v2192_v7 = vmin.u32 %v495_v6, %v493_v5  ;;  %v523_v39 = vand.u32 3, %v522_v38  ;;  %v703_v6 = vld [vmem:[%s3301_s5] sm:$0xff] }
  0xbc   : > { %v497_v9 = vclz %v2192_v7  ;;  %vm528_vm10 = vcmp.eq.s32.totalorder %v523_v39, 2  ;;  %vm525_vm11 = vcmp.eq.s32.totalorder %v523_v39, 0  ;;  %vm524_vm12 = vcmp.lt.s32.totalorder %v523_v39, 2 }
  0xbe   : > { %v2193_v11 = vadd.s32 4294967294, %v497_v9 }
  0xc0   : > { %vm2194_vm7 = vcmp.lt.s32.totalorder %v2193_v11, 0 }
  0xc1   : > { %v500_v12 = vsel %vm2194_vm7, 0, %v2193_v11 }
  0xc2   : > { %v501_v14 = vsub.s32 32, %v500_v12  ;;  %v505_v16 = vsub.s32 4294967266, %v500_v12  ;;  %v502_v17 = vshll.u32 %v493_v5, %v500_v12  ;;  %v704_v5 = vld [vmem:[%s3302_s6] sm:$0xff] }
  0xc4   : > { %v503_v18 = vshrl.u32 %v485_v13, %v501_v14  ;;  %v506_v19 = vadd.s32 127, %v505_v16  ;;  %v611_v16 = vld [vmem:[%s3300_s4] sm:$0xf] }
  0xc6   : > { %v504_v20 = vor.u32 %v503_v18, %v502_v17  ;;  %v507_v22 = vshll.u32 %v506_v19, 23 }
  0xc8   : > { %v508_v24 = vor.u32 4788187, %v507_v22  ;;  %v511_v27 = vcvt.s32.f32 %v504_v20 }
  0xca   : > { %v509_v25 = vand.u32 2147483647, %v508_v24 }
  0xcc   : > { %v512_v28 = vmul.f32 %v511_v27, %v509_v25 }
  0xce   : > { %v513_v31 = vxor.u32 2147483648, %v512_v28 }
  0xd0   : > { %v514_v33 = vsel %vm431_vm8, %v513_v31, %v512_v28 }
  0xd1   : > { %v517_v36 = vsel %vm430_vm9, %v2821_v10, %v514_v33 }
  0xd2   : > { %2552 = vcosq.f32 %v517_v36 }
  0xd3   : > { %2554 = vsinq.f32 %v517_v36 }
  0xdc   : > { %v2553_v40 = vpop.eup %2552 }
  0xdd   : > { %v2555_v41 = vpop.eup %2554  ;;  %v529_v42 = vxor.u32 2147483648, %v2553_v40 }
  0xde   : > { %v526_v43 = vxor.u32 2147483648, %v2555_v41 }
  0xdf   : > { %v530_v44 = vsel %vm528_vm10, %v529_v42, %v2555_v41 }
  0xe0   : > { %v527_v45 = vsel %vm525_vm11, %v2553_v40, %v526_v43 }
  0xe1   : > { %v531_v15 = vsel %vm524_vm12, %v527_v45, %v530_v44 }
  0xe2   : > { %v532_v46 = vsel %vm521_vm13, nan, %v531_v15 }
  0xe3   : > { %v533_v47 = vmul.f32 %v532_v46, %v532_v46 }
  0xe5   : > { %v539_v49 = vmul.f32 %v537_v48, %v533_v47 }
  0xe7   : > { %v540_v50 = vadd.f32 %v539_v49, %v2818_v8 }
  0xe9   : > { %v541_v51 = vpack.c.bf16 %v540_v50, %v540_v50 }
  0xeb   : > { %2302 = vmatmul.mubr.msk.bf16.vlgmr.msra.gmra.mrb[0].mxu0 %vm566_vm14, %v541_v51 }
  0xec   : > { %2327 = vmatprep.mubr.msk.bf16.mxu0 %vm2646_vm0, %v2645_v4 }
 0x1be   : > { %v604_v52 = vpop.f32.mrb[0].mxu0 }
 0x1bf   : > { %617 = vrot.lane.b32.xlu1 %v604_v52, %s2653_s29  ;;  %v2303_v53 = vpop.f32.mrb[1].mxu0  ;;  %v2467_v10 = vpack.i.bf16 %v2645_v4, %v604_v52 }
 0x1c0   : > { %v607_v54 = vpop.f32.mrb[2].mxu0 }
 0x1c1   : > { %2468 = vrot.lane.b32.xlu0 %v2467_v10, %s3309_s15  ;;  %v2304_v55 = vpop.f32.mrb[3].mxu0 }
 0x1c3   : > { %2463 = vrot.lane.b32.xlu1 %v2467_v10, %s2655_s16 }
 0x231   : > { %v618_v8 = vpop.permute.xlu1 %617 }
 0x232   : > { %v638_v56 = vpack.c.bf16 %v618_v8, %v2645_v4  ;;  %v639_v57 = vpack.c.bf16 %v618_v8, %v604_v52 }
 0x233   : > { %v2469_v58 = vpop.permute.xlu0 %2468 }
 0x234   : > { %v2471_v59 = vunpack.i.h.bf16 %v2469_v58  ;;  %v2470_v60 = vunpack.i.l.bf16 %v2469_v58  ;;  %648 = vrot.lane.b32.xlu0 %v639_v57, %s2656_s17  ;;  %646 = vrot.lane.b32.xlu1 %v638_v56, %s2656_s17 }
 0x235   : > { %v2464_v61 = vpop.permute.xlu1 %2463 }
 0x236   : > { %v2466_v62 = vunpack.i.h.bf16 %v2464_v61  ;;  %v2465_v63 = vunpack.i.l.bf16 %v2464_v61  ;;  %v635_v2 = vsel %vm634_vm1, %v2470_v60, %v2471_v59 }
 0x238   : > { %v640_v0 = vpack.c.bf16 %v2470_v60, %v2465_v63  ;;  %v627_v1 = vsel %vm626_vm15, %v2465_v63, %v2466_v62 }
 0x239   : > { %v641_v3 = vpack.c.bf16 %v635_v2, %v627_v1 }
 0x23a   : > { %650 = vrot.lane.b32.xlu1 %v640_v0, %s2656_s17 }
 0x23b   : > { %652 = vrot.lane.b32.xlu0 %v641_v3, %s2656_s17  ;;  %s3311_s17 = smov 119  }
 0x23e   : > { %707 = vperm.xlu1 %2472, %v703_v6  }
 0x23f   : > { %818 = vperm.xlu0 %2461, %v704_v5  }
 0x2a6   : > { %v649_v7 = vpop.permute.xlu0 %648  ;;  %v647_v9 = vpop.permute.xlu1 %646 }
 0x2a7   : > { %v655_v11 = vsel %vm654_vm2, %v647_v9, %v649_v7 }
 0x2a8   : > { %2306 = vmatpush3.bf16.msra.mxu1 %v655_v11 }
 0x2a9   : > { %2307 = vmatprep.subr.bf16.mxu1 %v2645_v4 }
 0x2ac   : > { %v651_v12 = vpop.permute.xlu1 %650 }
 0x2ad   : > { %v653_v13 = vpop.permute.xlu0 %652 }
 0x2ae   : > { %v656_v14 = vsel %vm654_vm2, %v651_v12, %v653_v13 }
 0x2af   : > { %2308 = vmatpush3.bf16.msra.mxu1 %v656_v14 }
 0x2b0   : > { %2313 = vmatprep.subr.bf16.mxu1 %v2645_v4 }
 0x2b2   : > { %2310 = vmatmul.mubr.msk.bf16.vlgmr.msra.gmra.mrb[0].mxu1 %vm659_vm3, %v611_v16 }
 0x2b3   : > { %2321 = vmatprep.mubr.msk.bf16.mxu1 %vm2646_vm0, %v2645_v4 }
 0x2bd   : > { %v708_v17 = vpop.permute.xlu1 %707 }
 0x385   : > { %v2876_v18 = vpop.f32.mrb[0].mxu1 }
 0x386   : > { %v2879_v19 = vmul.f32 %v708_v17, %v2876_v18  ;;  %v2311_v20 = vpop.f32.mrb[1].mxu1 }
 0x387   : > { %v700_v22 = vpop.f32.mrb[2].mxu1 }
 0x388   : > { %v714_v24 = vand.u32 2139095040, %v2879_v19  ;;  %v2312_v25 = vpop.f32.mrb[3].mxu1  ;;  %v711_v31 = vand.u32 2147483647, %v2879_v19  ;;  %vm713_vm11 = vcmp.lt.s32.totalorder %v2879_v19, 0  ;;  %vm803_vm3 = vweird.f32 %v2879_v19 }
 0x38a   : > { %v715_v27 = vshrl.u32 %v714_v24, 23  ;;  %v718_v36 = vand.u32 8388607, %v711_v31  ;;  %vm712_vm12 = vcmp.le.f32.partialorder %v711_v31, 0.7853982 }
 0x38c   : > { %v2201_v28 = vadd.s32 4294967169, %v715_v27  ;;  %v719_v48 = vor.u32 8388608, %v718_v36 }
 0x38e   : > { %v721_v30 = vadd.s32 1, %v2201_v28  ;;  %v759_v60 = vshll.u32 %v719_v48, 8 }
 0x390   : > { %vm722_vm4 = vcmp.gt.s32.totalorder %v721_v30, 0 }
 0x391   : > { %v723_v33 = vsel %vm722_vm4, %v721_v30, 0  ;;  %vm836_vm4 = vcmask 1039360  }
 0x392   : > { %v725_v34 = vand.u32 31, %v723_v33  ;;  %v724_v38 = vshrl.u32 %v723_v33, 5 }
 0x394   : > { %v726_v37 = vsub.s32 32, %v725_v34  ;;  %v728_v39 = vshll.u32 %v2647_v21, %v725_v34  ;;  %v731_v40 = vshll.u32 %v2648_v23, %v725_v34  ;;  %v734_v43 = vshll.u32 %v2649_v26, %v725_v34 }
 0x395   : > { %v737_v45 = vshll.u32 %v2650_v29, %v725_v34  ;;  %v740_v46 = vshll.u32 %v2651_v32, %v725_v34  ;;  %vm743_vm5 = vcmp.lt.s32.totalorder %v724_v38, 1  ;;  %vm746_vm6 = vcmp.lt.s32.totalorder %v724_v38, 4 }
 0x396   : > { %v729_v41 = vshrl.u32 %v2648_v23, %v726_v37  ;;  %v732_v42 = vshrl.u32 %v2649_v26, %v726_v37  ;;  %v735_v44 = vshrl.u32 %v2650_v29, %v726_v37  ;;  %v738_v15 = vshrl.u32 %v2651_v32, %v726_v37 }
 0x397   : > { %v741_v47 = vshrl.u32 %v2652_v35, %v726_v37  ;;  %v727_v8 = vshrl.u32 %v2647_v21, %v726_v37  ;;  %vm745_vm7 = vcmp.lt.s32.totalorder %v724_v38, 3  ;;  %vm744_vm8 = vcmp.lt.s32.totalorder %v724_v38, 2 }
 0x398   : > { %v730_v49 = vor.u32 %v729_v41, %v728_v39  ;;  %v733_v50 = vor.u32 %v732_v42, %v731_v40  ;;  %v736_v51 = vor.u32 %v735_v44, %v734_v43  ;;  %v739_v52 = vor.u32 %v738_v15, %v737_v45 }
 0x399   : > { %v742_v53 = vor.u32 %v741_v47, %v740_v46 }
 0x39a   : > { %v748_v10 = vsel %vm746_vm6, %v736_v51, 2102212464  ;;  %v751_v54 = vsel %vm743_vm5, %v730_v49, %v733_v50  ;;  %v755_v55 = vsel %vm743_vm5, %v733_v50, %v736_v51  ;;  %v752_v56 = vsel %vm746_vm6, %v739_v52, 920167782 }
 0x39b   : > { %v756_v57 = vsel %vm746_vm6, %v742_v53, 1326507024  ;;  %v753_v58 = vsel %vm745_vm7, %v736_v51, %v752_v56  ;;  %v747_v61 = vsel %vm743_vm5, %v727_v8, %v730_v49  ;;  %v749_v62 = vsel %vm745_vm7, %v733_v50, %v748_v10 }
 0x39c   : > { %v757_v59 = vsel %vm745_vm7, %v739_v52, %v756_v57  ;;  %v754_v63 = vsel %vm744_vm8, %v751_v54, %v753_v58  ;;  %v750_v6 = vsel %vm744_vm8, %v747_v61, %v749_v62  ;;  %v819_v57 = vpop.permute.xlu0 %818  ;;  %vm856_vm5 = vcmask 1014784  }
 0x39d   : > { %v758_v0 = vsel %vm744_vm8, %v755_v55, %v757_v59  ;;  %v2899_v3 = vmul.u32.u64.low %v759_v60, %v754_v63  ;;  %v2900_v5 = vmul.u32.u64.high %v759_v60, %v754_v63, %v2899_v3  ;;  %v766_v9 = vmul.u32 %v759_v60, %v750_v6 }
 0x39e   : > { %v2896_v1 = vmul.u32.u64.low %v759_v60, %v758_v0  ;;  %v2897_v2 = vmul.u32.u64.high %v759_v60, %v758_v0, %v2896_v1  ;;  %vm864_vm6 = vcmask 1006592   ;;  %vm872_vm7 = vcmask 998400  }
 0x39f   : > { %v769_v7 = vadd.s32 1, %v2900_v5  ;;  %vm925_vm8 = vcmask 1043456  }
 0x3a0   : > { %vm768_vm9 = vc.u32 %v2897_v2, %v2899_v3  ;;  %v767_v28 = vadd.s32 %v2899_v3, %v2897_v2 }
 0x3a1   : > { %v770_v11 = vsel %vm768_vm9, %v769_v7, %v2900_v5  ;;  %vm921_vm9 = vcmask 457728  }
 0x3a2   : > { %v771_v12 = vadd.s32 %v770_v11, %v766_v9 }
 0x3a4   : > { %v772_v13 = vadd.s32 536870912, %v771_v12 }
 0x3a6   : > { %v773_v14 = vshrl.u32 %v772_v13, 30 }
 0x3a8   : > { %v774_v16 = vshll.u32 %v773_v14, 30  ;;  %v797_v44 = vsub.s32 4, %v773_v14 }
 0x3aa   : > { %v775_v17 = vsub.s32 %v771_v12, %v774_v16  ;;  %v798_v46 = vsel %vm713_vm11, %v797_v44, %v773_v14  ;;  %v2213_v44 = vld [vmem:[%s3307_s11] ss:$0 sm:$0xff] }
 0x3ab   : > { %v800_v48 = vsel %vm712_vm12, 0, %v798_v46 }
 0x3ac   : > { %v777_v20 = vsub.s32 0, %v775_v17  ;;  %v804_v49 = vadd.s32 3, %v800_v48 }
 0x3ae   : > { %v2202_v22 = vmin.u32 %v777_v20, %v775_v17  ;;  %v805_v50 = vand.u32 3, %v804_v49 }
 0x3b0   : > { %v779_v24 = vclz %v2202_v22  ;;  %vm810_vm13 = vcmp.eq.s32.totalorder %v805_v50, 2  ;;  %vm807_vm14 = vcmp.eq.s32.totalorder %v805_v50, 0  ;;  %vm806_vm2 = vcmp.lt.s32.totalorder %v805_v50, 2 }
 0x3b2   : > { %v2203_v25 = vadd.s32 4294967294, %v779_v24 }
 0x3b4   : > { %vm2204_vm10 = vcmp.lt.s32.totalorder %v2203_v25, 0 }
 0x3b5   : > { %v782_v27 = vsel %vm2204_vm10, 0, %v2203_v25 }
 0x3b6   : > { %v783_v30 = vsub.s32 32, %v782_v27  ;;  %v787_v33 = vsub.s32 4294967266, %v782_v27  ;;  %v784_v34 = vshll.u32 %v775_v17, %v782_v27 }
 0x3b8   : > { %v785_v36 = vshrl.u32 %v767_v28, %v783_v30  ;;  %v788_v37 = vadd.s32 127, %v787_v33 }
 0x3ba   : > { %v786_v38 = vor.u32 %v785_v36, %v784_v34  ;;  %v789_v39 = vshll.u32 %v788_v37, 23 }
 0x3bc   : > { %v790_v40 = vor.u32 4788187, %v789_v39  ;;  %v793_v42 = vcvt.s32.f32 %v786_v38  ;;  %v2206_v39 = vld [vmem:[%s3301_s5 + $0x8] sm:$0xff] }
 0x3be   : > { %v791_v41 = vand.u32 2147483647, %v790_v40  ;;  %v825_v40 = vld [vmem:[%s3304_s8] sm:$0xff] }
 0x3c0   : > { %v794_v43 = vmul.f32 %v793_v42, %v791_v41  ;;  %v1093_v41 = vld [vmem:[%s3306_s10] sm:$0xff]  ;;  %v2207_v42 = vld [vmem:[%s3302_s6 + $0x8] sm:$0xff] }
 0x3c2   : > { %v795_v45 = vxor.u32 2147483648, %v794_v43 }
 0x3c4   : > { %v796_v15 = vsel %vm713_vm11, %v795_v45, %v794_v43  ;;  %v2215_v43 = vld [vmem:[%s3307_s11 + $0x1] ss:$0 sm:$0xff]  ;;  %v2217_v45 = vld [vmem:[%s3302_s6 + $0x10] sm:$0xff] }
 0x3c5   : > { %v799_v47 = vsel %vm712_vm12, %v2879_v19, %v796_v15  ;;  %v2216_v15 = vld [vmem:[%s3301_s5 + $0x10] sm:$0xff] }
 0x3c6   : > { %2556 = vcosq.f32 %v799_v47 }
 0x3c7   : > { %2558 = vsinq.f32 %v799_v47 }
 0x3d0   : > { %v2557_v51 = vpop.eup %2556 }
 0x3d1   : > { %v2559_v52 = vpop.eup %2558  ;;  %v811_v53 = vxor.u32 2147483648, %v2557_v51 }
 0x3d2   : > { %v808_v10 = vxor.u32 2147483648, %v2559_v52 }
 0x3d3   : > { %v812_v54 = vsel %vm810_vm13, %v811_v53, %v2559_v52 }
 0x3d4   : > { %v809_v55 = vsel %vm807_vm14, %v2557_v51, %v808_v10 }
 0x3d5   : > { %v813_v31 = vsel %vm806_vm2, %v809_v55, %v812_v54 }
 0x3d6   : > { %v814_v8 = vsel %vm803_vm3, nan, %v813_v31 }
 0x3d7   : > { %v815_v56 = vmul.f32 %v814_v8, %v814_v8 }
 0x3d9   : > { %v821_v58 = vmul.f32 %v819_v57, %v815_v56  ;;  %v824_v56 = vld [vmem:[%s3303_s7] sm:$0xf] }
 0x3db   : > { %v822_v59 = vadd.f32 %v821_v58, %v2876_v18 }
 0x3dd   : > { %v2478_v60 = vpack.i.bf16 %v822_v59, %v2645_v4  ;;  %v2483_v61 = vpack.i.bf16 %v2645_v4, %v822_v59 }
 0x3df   : > { %2479 = vrot.lane.b32.xlu0 %v2478_v60, %s2655_s16  ;;  %2474 = vrot.lane.b32.xlu1 %v2478_v60, %s2653_s29  ;;  %s2660_s29 = smov 3   ;;  %s3319_s16 = smov 122  }
 0x3e3   : > { %2484 = vrot.lane.b32.xlu0 %v2483_v61, %s2657_s18  ;;  %847 = vrot.lane.b32.xlu1 %v822_v59, %s3309_s15  ;;  %s3312_s18 = smov 110   ;;  %s3321_s15 = smov 110  }
 0x3e7   : > { %2494 = vrot.lane.b32.xlu0 %v2483_v61, %s3310_s19  ;;  %2489 = vrot.lane.b32.xlu1 %v2483_v61, %s2659_s20  ;;  %s2664_s20 = smov 113   ;;  %s3322_s19 = smov 119  }
 0x451   : > { %v2480_v19 = vpop.permute.xlu0 %2479  ;;  %v2475_v62 = vpop.permute.xlu1 %2474 }
 0x452   : > { %v2482_v63 = vunpack.i.h.bf16 %v2480_v19  ;;  %v2481_v0 = vunpack.i.l.bf16 %v2480_v19  ;;  %v2477_v1 = vunpack.i.h.bf16 %v2475_v62  ;;  %v2476_v2 = vunpack.i.l.bf16 %v2475_v62 }
 0x454   : > { %v877_v3 = vpack.c.bf16 %v2477_v1, %v822_v59  ;;  %v837_v5 = vsel %vm836_vm4, %v2476_v2, %v2477_v1  ;;  %v844_v11 = vsel %vm626_vm15, %v2481_v0, %v2482_v63  ;;  %vm913_vm15 = vcmask 23552  }
 0x455   : > { %v2485_v6 = vpop.permute.xlu0 %2484  ;;  %v848_v7 = vpop.permute.xlu1 %847  ;;  %v876_v9 = vpack.c.bf16 %v837_v5, %v2645_v4 }
 0x456   : > { %899 = vrot.lane.b32.xlu0 %v877_v3, %s2660_s29  ;;  %v2487_v12 = vunpack.i.h.bf16 %v2485_v6  ;;  %v2486_v13 = vunpack.i.l.bf16 %v2485_v6  ;;  %v879_v14 = vpack.c.bf16 %v848_v7, %v2482_v63  ;;  %v878_v16 = vpack.c.bf16 %v848_v7, %v844_v11 }
 0x457   : > { %897 = vrot.lane.b32.xlu1 %v876_v9, %s2660_s29 }
 0x458   : > { %v857_v30 = vsel %vm856_vm5, %v2486_v13, %v2487_v12 }
 0x459   : > { %v2495_v17 = vpop.permute.xlu0 %2494  ;;  %v2490_v20 = vpop.permute.xlu1 %2489 }
 0x45a   : > { %v2497_v22 = vunpack.i.h.bf16 %v2495_v17  ;;  %v2496_v24 = vunpack.i.l.bf16 %v2495_v17  ;;  %v2492_v25 = vunpack.i.h.bf16 %v2490_v20  ;;  %v2491_v27 = vunpack.i.l.bf16 %v2490_v20  ;;  %903 = vrot.lane.b32.xlu0 %v879_v14, %s2660_s29 }
 0x45b   : > { %901 = vrot.lane.b32.xlu1 %v878_v16, %s2660_s29 }
 0x45c   : > { %v880_v28 = vpack.c.bf16 %v2491_v27, %v2486_v13  ;;  %v865_v33 = vsel %vm864_vm6, %v2491_v27, %v2492_v25  ;;  %v873_v36 = vsel %vm872_vm7, %v2496_v24, %v2497_v22  ;;  %v882_v37 = vpack.c.bf16 %v2496_v24, %v2496_v24 }
 0x45d   : > { %v881_v34 = vpack.c.bf16 %v865_v33, %v857_v30  ;;  %v883_v38 = vpack.c.bf16 %v873_v36, %v873_v36 }
 0x45f   : > { %907 = vrot.lane.b32.xlu0 %v881_v34, %s2660_s29  ;;  %905 = vrot.lane.b32.xlu1 %v880_v28, %s2660_s29 }
 0x463   : > { %911 = vrot.lane.b32.xlu0 %v883_v38, %s2660_s29  ;;  %909 = vrot.lane.b32.xlu1 %v882_v37, %s2660_s29  ;;  %s2666_s29 = smov 92  }
 0x467   : > { %975 = vperm.xlu0 %2461, %v2206_v39   ;;  %886 = vperm.xlu1 %2472, %v825_v40  }
 0x46b   : > { %1096 = vperm.xlu0 %2461, %v1093_v41   ;;  %1086 = vperm.xlu1 %2472, %v2207_v42  }
 0x46f   : > { %1165 = vperm.xlu0 %2461, %v2215_v43   ;;  %1153 = vperm.xlu1 %2472, %v2213_v44  }
 0x473   : > { %1287 = vperm.xlu0 %2461, %v2217_v45   ;;  %1176 = vperm.xlu1 %2472, %v2216_v15  }
 0x4c8   : > { %v900_v46 = vpop.permute.xlu0 %899 }
 0x4c9   : > { %v898_v47 = vpop.permute.xlu1 %897 }
 0x4ca   : > { %v914_v48 = vsel %vm913_vm15, %v898_v47, %v900_v46 }
 0x4cb   : > { %2314 = vmatpush3.bf16.msra.mxu1 %v914_v48 }
 0x4cc   : > { %v904_v49 = vpop.permute.xlu0 %903  ;;  %2315 = vmatprep.subr.bf16.mxu1 %v2645_v4 }
 0x4cd   : > { %v902_v50 = vpop.permute.xlu1 %901 }
 0x4ce   : > { %v915_v51 = vsel %vm913_vm15, %v902_v50, %v904_v49 }
 0x4cf   : > { %2316 = vmatpush3.bf16.msra.mxu1 %v915_v51 }
 0x4d0   : > { %2317 = vmatprep.subr.bf16.mxu1 %v2645_v4 }
 0x4d1   : > { %v908_v52 = vpop.permute.xlu0 %907  ;;  %v906_v53 = vpop.permute.xlu1 %905 }
 0x4d2   : > { %v916_v10 = vsel %vm913_vm15, %v906_v53, %v908_v52 }
 0x4d3   : > { %2318 = vmatpush3.bf16.msra.mxu1 %v916_v10 }
 0x4d4   : > { %2319 = vmatprep.subr.bf16.mxu1 %v2645_v4 }
 0x4d5   : > { %v912_v54 = vpop.permute.xlu0 %911  ;;  %v910_v55 = vpop.permute.xlu1 %909 }
 0x4d6   : > { %v917_v31 = vsel %vm913_vm15, %v910_v55, %v912_v54 }
 0x4d7   : > { %v927_v8 = vsel %vm925_vm8, %v917_v31, 0 }
 0x4d8   : > { %2320 = vmatpush3.bf16.msra.mxu1 %v927_v8 }
 0x4d9   : > { %2343 = vmatprep.subr.bf16.mxu1 %v2645_v4 }
 0x4db   : > { %2322 = vmatmul.mubr.msk.bf16.vlgmr.msra.gmra.mrb[4].mxu1 %vm921_vm9, %v824_v56 }
 0x4dc   : > { %2345 = vmatprep.mubr.msk.bf16.mxu1 %vm2646_vm0, %v2645_v4 }
 0x4e6   : > { %v887_v57 = vpop.permute.xlu1 %886  ;;  %v976_v61 = vpop.permute.xlu0 %975 }
 0x5ae   : > { %v963_v58 = vpop.f32.mrb[4].mxu1 }
 0x5af   : > { %v2960_v59 = vadd.f32 %v963_v58, %v887_v57  ;;  %v2323_v60 = vpop.f32.mrb[5].mxu1 }
 0x5b0   : > { %v966_v19 = vpop.f32.mrb[6].mxu1 }
 0x5b1   : > { %v2963_v62 = vmul.f32 %v976_v61, %v2960_v59  ;;  %v2324_v63 = vpop.f32.mrb[7].mxu1 }
 0x5b3   : > { %v982_v0 = vand.u32 2139095040, %v2963_v62  ;;  %v979_v5 = vand.u32 2147483647, %v2963_v62  ;;  %vm981_vm4 = vcmp.lt.s32.totalorder %v2963_v62, 0 }
 0x5b5   : > { %v983_v1 = vshrl.u32 %v982_v0, 23  ;;  %v986_v9 = vand.u32 8388607, %v979_v5  ;;  %vm980_vm5 = vcmp.le.f32.partialorder %v979_v5, 0.7853982 }
 0x5b7   : > { %v2208_v2 = vadd.s32 4294967169, %v983_v1  ;;  %v987_v30 = vor.u32 8388608, %v986_v9 }
 0x5b9   : > { %v989_v3 = vadd.s32 1, %v2208_v2  ;;  %v1027_v46 = vshll.u32 %v987_v30, 8 }
 0x5bb   : > { %vm990_vm10 = vcmp.gt.s32.totalorder %v989_v3, 0 }
 0x5bc   : > { %v991_v6 = vsel %vm990_vm10, %v989_v3, 0 }
 0x5bd   : > { %v993_v7 = vand.u32 31, %v991_v6  ;;  %v992_v12 = vshrl.u32 %v991_v6, 5 }
 0x5bf   : > { %v994_v11 = vsub.s32 32, %v993_v7  ;;  %v996_v13 = vshll.u32 %v2647_v21, %v993_v7  ;;  %v999_v14 = vshll.u32 %v2648_v23, %v993_v7  ;;  %v1002_v20 = vshll.u32 %v2649_v26, %v993_v7 }
 0x5c0   : > { %v1005_v24 = vshll.u32 %v2650_v29, %v993_v7  ;;  %v1008_v27 = vshll.u32 %v2651_v32, %v993_v7  ;;  %vm1011_vm11 = vcmp.lt.s32.totalorder %v992_v12, 1  ;;  %vm1014_vm12 = vcmp.lt.s32.totalorder %v992_v12, 4 }
 0x5c1   : > { %v997_v16 = vshrl.u32 %v2648_v23, %v994_v11  ;;  %v1000_v17 = vshrl.u32 %v2649_v26, %v994_v11  ;;  %v1003_v22 = vshrl.u32 %v2650_v29, %v994_v11  ;;  %v1006_v25 = vshrl.u32 %v2651_v32, %v994_v11 }
 0x5c2   : > { %v1009_v28 = vshrl.u32 %v2652_v35, %v994_v11  ;;  %v995_v42 = vshrl.u32 %v2647_v21, %v994_v11  ;;  %vm1013_vm13 = vcmp.lt.s32.totalorder %v992_v12, 3  ;;  %vm1012_vm14 = vcmp.lt.s32.totalorder %v992_v12, 2 }
 0x5c3   : > { %v998_v33 = vor.u32 %v997_v16, %v996_v13  ;;  %v1001_v34 = vor.u32 %v1000_v17, %v999_v14  ;;  %v1004_v36 = vor.u32 %v1003_v22, %v1002_v20  ;;  %v1007_v37 = vor.u32 %v1006_v25, %v1005_v24 }
 0x5c4   : > { %v1010_v38 = vor.u32 %v1009_v28, %v1008_v27 }
 0x5c5   : > { %v1016_v39 = vsel %vm1014_vm12, %v1004_v36, 2102212464  ;;  %v1019_v40 = vsel %vm1011_vm11, %v998_v33, %v1001_v34  ;;  %v1023_v41 = vsel %vm1011_vm11, %v1001_v34, %v1004_v36  ;;  %v1020_v43 = vsel %vm1014_vm12, %v1007_v37, 920167782 }
 0x5c6   : > { %v1024_v44 = vsel %vm1014_vm12, %v1010_v38, 1326507024  ;;  %v1021_v45 = vsel %vm1013_vm13, %v1004_v36, %v1020_v43  ;;  %v1015_v47 = vsel %vm1011_vm11, %v995_v42, %v998_v33  ;;  %v1017_v48 = vsel %vm1013_vm13, %v1001_v34, %v1016_v39 }
 0x5c7   : > { %v1025_v15 = vsel %vm1013_vm13, %v1007_v37, %v1024_v44  ;;  %v1022_v49 = vsel %vm1012_vm14, %v1019_v40, %v1021_v45  ;;  %v1018_v54 = vsel %vm1012_vm14, %v1015_v47, %v1017_v48  ;;  %vm1071_vm11 = vweird.f32 %v2963_v62  ;;  %v1087_v45 = vpop.permute.xlu1 %1086 }
 0x5c8   : > { %v1026_v50 = vsel %vm1012_vm14, %v1023_v41, %v1025_v15  ;;  %v2983_v53 = vmul.u32.u64.low %v1027_v46, %v1022_v49  ;;  %v2984_v10 = vmul.u32.u64.high %v1027_v46, %v1022_v49, %v2983_v53  ;;  %v1034_v31 = vmul.u32 %v1027_v46, %v1018_v54  ;;  %v1091_v49 = vld [vmem:[%s3305_s9] sm:$0xf] }
 0x5c9   : > { %v2980_v51 = vmul.u32.u64.low %v1027_v46, %v1026_v50  ;;  %v2981_v52 = vmul.u32.u64.high %v1027_v46, %v1026_v50, %v2980_v51  ;;  %vm1099_vm12 = vcmask 64512  }
 0x5ca   : > { %v1037_v55 = vadd.s32 1, %v2984_v10 }
 0x5cb   : > { %vm1036_vm2 = vc.u32 %v2981_v52, %v2983_v53  ;;  %v1035_v3 = vadd.s32 %v2983_v53, %v2981_v52  ;;  %v1154_v50 = vpop.permute.xlu1 %1153 }
 0x5cc   : > { %v1038_v8 = vsel %vm1036_vm2, %v1037_v55, %v2984_v10  ;;  %v1156_v54 = vmul.f32 %v1154_v50, %v2876_v18 }
 0x5cd   : > { %v1039_v56 = vadd.s32 %v1038_v8, %v1034_v31 }
 0x5cf   : > { %v1040_v57 = vadd.s32 536870912, %v1039_v56 }
 0x5d1   : > { %v1041_v58 = vshrl.u32 %v1040_v57, 30 }
 0x5d3   : > { %v1042_v60 = vshll.u32 %v1041_v58, 30  ;;  %v1065_v24 = vsub.s32 4, %v1041_v58 }
 0x5d5   : > { %v1043_v61 = vsub.s32 %v1039_v56, %v1042_v60  ;;  %v1066_v28 = vsel %vm981_vm4, %v1065_v24, %v1041_v58  ;;  %v1177_v56 = vpop.permute.xlu1 %1176 }
 0x5d6   : > { %v1068_v33 = vsel %vm980_vm5, 0, %v1066_v28 }
 0x5d7   : > { %v1045_v19 = vsub.s32 0, %v1043_v61  ;;  %v1072_v34 = vadd.s32 3, %v1068_v33 }
 0x5d9   : > { %v2209_v63 = vmin.u32 %v1045_v19, %v1043_v61  ;;  %v1073_v36 = vand.u32 3, %v1072_v34 }
 0x5db   : > { %v1047_v0 = vclz %v2209_v63  ;;  %vm1078_vm6 = vcmp.eq.s32.totalorder %v1073_v36, 2  ;;  %vm1075_vm15 = vcmp.eq.s32.totalorder %v1073_v36, 0  ;;  %vm1074_vm10 = vcmp.lt.s32.totalorder %v1073_v36, 2 }
 0x5dd   : > { %v2210_v1 = vadd.s32 4294967294, %v1047_v0 }
 0x5df   : > { %vm2211_vm3 = vcmp.lt.s32.totalorder %v2210_v1, 0 }
 0x5e0   : > { %v1050_v2 = vsel %vm2211_vm3, 0, %v2210_v1 }
 0x5e1   : > { %v1051_v6 = vsub.s32 32, %v1050_v2  ;;  %v1055_v7 = vsub.s32 4294967266, %v1050_v2  ;;  %v1052_v9 = vshll.u32 %v1043_v61, %v1050_v2 }
 0x5e3   : > { %v1053_v11 = vshrl.u32 %v1035_v3, %v1051_v6  ;;  %v1056_v12 = vadd.s32 127, %v1055_v7 }
 0x5e5   : > { %v1054_v13 = vor.u32 %v1053_v11, %v1052_v9  ;;  %v1057_v14 = vshll.u32 %v1056_v12, 23 }
 0x5e7   : > { %v1058_v16 = vor.u32 4788187, %v1057_v14  ;;  %v1061_v20 = vcvt.s32.f32 %v1054_v13 }
 0x5e9   : > { %v1059_v17 = vand.u32 2147483647, %v1058_v16 }
 0x5eb   : > { %v1062_v22 = vmul.f32 %v1061_v20, %v1059_v17 }
 0x5ed   : > { %v1063_v25 = vxor.u32 2147483648, %v1062_v22 }
 0x5ef   : > { %v1064_v27 = vsel %vm981_vm4, %v1063_v25, %v1062_v22 }
 0x5f0   : > { %v1067_v30 = vsel %vm980_vm5, %v2963_v62, %v1064_v27  ;;  %v1097_v62 = vpop.permute.xlu0 %1096 }
 0x5f1   : > { %2560 = vcosq.f32 %v1067_v30 }
 0x5f2   : > { %2562 = vsinq.f32 %v1067_v30 }
 0x5f4   : > { %v1166_v53 = vpop.permute.xlu0 %1165 }
 0x5fb   : > { %v2561_v37 = vpop.eup %2560 }
 0x5fc   : > { %v2563_v38 = vpop.eup %2562  ;;  %v1079_v39 = vxor.u32 2147483648, %v2561_v37 }
 0x5fd   : > { %v1076_v40 = vxor.u32 2147483648, %v2563_v38 }
 0x5fe   : > { %v1080_v41 = vsel %vm1078_vm6, %v1079_v39, %v2563_v38 }
 0x5ff   : > { %v1077_v42 = vsel %vm1075_vm15, %v2561_v37, %v1076_v40 }
 0x600   : > { %v1081_v5 = vsel %vm1074_vm10, %v1077_v42, %v1080_v41 }
 0x601   : > { %v1082_v43 = vsel %vm1071_vm11, nan, %v1081_v5 }
 0x602   : > { %v1083_v44 = vmul.f32 %v1082_v43, %v1082_v43 }
 0x604   : > { %v1089_v15 = vmul.f32 %v1087_v45, %v1083_v44 }
 0x606   : > { %v1090_v46 = vadd.f32 %v1089_v15, %v2960_v59 }
 0x608   : > { %v1092_v47 = vpack.c.bf16 %v1090_v46, %v1090_v46 }
 0x60a   : > { %v1104_v48 = vsel %vm925_vm8, %v1092_v47, 0 }
 0x60b   : > { %2326 = vmatpush3.bf16.msra.mxu0 %v1104_v48 }
 0x60c   : > { %2331 = vmatprep.subr.bf16.mxu0 %v2645_v4 }
 0x60e   : > { %2328 = vmatmul.mubr.msk.bf16.vlgmr.msra.gmra.mrb[4].mxu0 %vm1099_vm12, %v1091_v49 }
 0x60f   : > { %2339 = vmatprep.mubr.msk.bf16.mxu0 %vm2646_vm0, %v2645_v4 }
 0x6e1   : > { %v1140_v51 = vpop.f32.mrb[4].mxu0 }
 0x6e2   : > { %v1141_v59 = vadd.f32 %v1140_v51, %v1097_v62  ;;  %v2329_v52 = vpop.f32.mrb[5].mxu0 }
 0x6e3   : > { %v1143_v10 = vpop.f32.mrb[6].mxu0 }
 0x6e4   : > { %v1168_v55 = vmul.f32 %v1166_v53, %v1141_v59  ;;  %v2330_v31 = vpop.f32.mrb[7].mxu0 }
 0x6e6   : > { %v3005_v8 = vadd.f32 %v1168_v55, %v1156_v54 }
 0x6e8   : > { %v3008_v57 = vmul.f32 %v1177_v56, %v3005_v8 }
 0x6ea   : > { %v1183_v58 = vand.u32 2139095040, %v3008_v57  ;;  %v1180_v63 = vand.u32 2147483647, %v3008_v57  ;;  %vm1182_vm15 = vcmp.lt.s32.totalorder %v3008_v57, 0 }
 0x6ec   : > { %v1184_v60 = vshrl.u32 %v1183_v58, 23  ;;  %v1187_v18 = vand.u32 8388607, %v1180_v63  ;;  %vm1181_vm10 = vcmp.le.f32.partialorder %v1180_v63, 0.7853982 }
 0x6ee   : > { %v2218_v61 = vadd.s32 4294967169, %v1184_v60  ;;  %v1188_v22 = vor.u32 8388608, %v1187_v18 }
 0x6f0   : > { %v1190_v19 = vadd.s32 1, %v2218_v61  ;;  %v1228_v42 = vshll.u32 %v1188_v22, 8 }
 0x6f2   : > { %vm1191_vm13 = vcmp.gt.s32.totalorder %v1190_v19, 0 }
 0x6f3   : > { %v1192_v0 = vsel %vm1191_vm13, %v1190_v19, 0 }
 0x6f4   : > { %v1194_v1 = vand.u32 31, %v1192_v0  ;;  %v1193_v3 = vshrl.u32 %v1192_v0, 5 }
 0x6f6   : > { %v1195_v2 = vsub.s32 32, %v1194_v1  ;;  %v1197_v6 = vshll.u32 %v2647_v21, %v1194_v1  ;;  %v1200_v7 = vshll.u32 %v2648_v23, %v1194_v1  ;;  %v1203_v12 = vshll.u32 %v2649_v26, %v1194_v1 }
 0x6f7   : > { %v1206_v14 = vshll.u32 %v2650_v29, %v1194_v1  ;;  %v1209_v17 = vshll.u32 %v2651_v32, %v1194_v1  ;;  %vm1212_vm14 = vcmp.lt.s32.totalorder %v1193_v3, 1  ;;  %vm1215_vm2 = vcmp.lt.s32.totalorder %v1193_v3, 4 }
 0x6f8   : > { %v1198_v9 = vshrl.u32 %v2648_v23, %v1195_v2  ;;  %v1201_v11 = vshrl.u32 %v2649_v26, %v1195_v2  ;;  %v1204_v13 = vshrl.u32 %v2650_v29, %v1195_v2  ;;  %v1207_v16 = vshrl.u32 %v2651_v32, %v1195_v2 }
 0x6f9   : > { %v1210_v20 = vshrl.u32 %v2652_v35, %v1195_v2  ;;  %v1196_v37 = vshrl.u32 %v2647_v21, %v1195_v2  ;;  %vm1214_vm3 = vcmp.lt.s32.totalorder %v1193_v3, 3  ;;  %vm1213_vm4 = vcmp.lt.s32.totalorder %v1193_v3, 2 }
 0x6fa   : > { %v1199_v24 = vor.u32 %v1198_v9, %v1197_v6  ;;  %v1202_v25 = vor.u32 %v1201_v11, %v1200_v7  ;;  %v1205_v27 = vor.u32 %v1204_v13, %v1203_v12  ;;  %v1208_v28 = vor.u32 %v1207_v16, %v1206_v14 }
 0x6fb   : > { %v1211_v30 = vor.u32 %v1210_v20, %v1209_v17 }
 0x6fc   : > { %v1217_v33 = vsel %vm1215_vm2, %v1205_v27, 2102212464  ;;  %v1220_v34 = vsel %vm1212_vm14, %v1199_v24, %v1202_v25  ;;  %v1224_v36 = vsel %vm1212_vm14, %v1202_v25, %v1205_v27  ;;  %v1221_v38 = vsel %vm1215_vm2, %v1208_v28, 920167782 }
 0x6fd   : > { %v1225_v39 = vsel %vm1215_vm2, %v1211_v30, 1326507024  ;;  %v1222_v40 = vsel %vm1214_vm3, %v1205_v27, %v1221_v38  ;;  %v1216_v5 = vsel %vm1212_vm14, %v1196_v37, %v1199_v24  ;;  %v1218_v43 = vsel %vm1214_vm3, %v1202_v25, %v1217_v33 }
 0x6fe   : > { %v1226_v41 = vsel %vm1214_vm3, %v1208_v28, %v1225_v39  ;;  %v1223_v44 = vsel %vm1213_vm4, %v1220_v34, %v1222_v40  ;;  %v1219_v49 = vsel %vm1213_vm4, %v1216_v5, %v1218_v43  ;;  %vm1272_vm2 = vweird.f32 %v3008_v57  ;;  %v1288_v39 = vpop.permute.xlu0 %1287 }
 0x6ff   : > { %v1227_v45 = vsel %vm1213_vm4, %v1224_v36, %v1226_v41  ;;  %v3028_v47 = vmul.u32.u64.low %v1228_v42, %v1223_v44  ;;  %v3029_v48 = vmul.u32.u64.high %v1228_v42, %v1223_v44, %v3028_v47  ;;  %v1235_v50 = vmul.u32 %v1228_v42, %v1219_v49 }
 0x700   : > { %v3025_v15 = vmul.u32.u64.low %v1228_v42, %v1227_v45  ;;  %v3026_v46 = vmul.u32.u64.high %v1228_v42, %v1227_v45, %v3025_v15  ;;  %vm1326_vm3 = vcmask 949248   ;;  %vm1334_vm4 = vcmask 924672  }
 0x701   : > { %v1238_v62 = vadd.s32 1, %v3029_v48 }
 0x702   : > { %vm1237_vm5 = vc.u32 %v3026_v46, %v3028_v47  ;;  %v1236_v61 = vadd.s32 %v3028_v47, %v3026_v46 }
 0x703   : > { %v1239_v51 = vsel %vm1237_vm5, %v1238_v62, %v3029_v48 }
 0x704   : > { %v1240_v59 = vadd.s32 %v1239_v51, %v1235_v50 }
 0x706   : > { %v1241_v52 = vadd.s32 536870912, %v1240_v59 }
 0x708   : > { %v1242_v53 = vshrl.u32 %v1241_v52, 30 }
 0x70a   : > { %v1243_v10 = vshll.u32 %v1242_v53, 30  ;;  %v1266_v13 = vsub.s32 4, %v1242_v53 }
 0x70c   : > { %v1244_v54 = vsub.s32 %v1240_v59, %v1243_v10  ;;  %v1267_v17 = vsel %vm1182_vm15, %v1266_v13, %v1242_v53  ;;  %v2235_v13 = vld [vmem:[%s3307_s11 + $0x2] ss:$0 sm:$0xff] }
 0x70d   : > { %v1269_v22 = vsel %vm1181_vm10, 0, %v1267_v17 }
 0x70e   : > { %v1246_v55 = vsub.s32 0, %v1244_v54  ;;  %v1273_v24 = vadd.s32 3, %v1269_v22 }
 0x710   : > { %v2219_v31 = vmin.u32 %v1246_v55, %v1244_v54  ;;  %v1274_v25 = vand.u32 3, %v1273_v24 }
 0x712   : > { %v1248_v56 = vclz %v2219_v31  ;;  %vm1279_vm11 = vcmp.eq.s32.totalorder %v1274_v25, 2  ;;  %vm1276_vm13 = vcmp.eq.s32.totalorder %v1274_v25, 0  ;;  %vm1275_vm14 = vcmp.lt.s32.totalorder %v1274_v25, 2 }
 0x714   : > { %v2220_v58 = vadd.s32 4294967294, %v1248_v56 }
 0x716   : > { %vm2221_vm6 = vcmp.lt.s32.totalorder %v2220_v58, 0 }
 0x717   : > { %v1251_v60 = vsel %vm2221_vm6, 0, %v2220_v58 }
 0x718   : > { %v1252_v19 = vsub.s32 32, %v1251_v60  ;;  %v1256_v0 = vsub.s32 4294967266, %v1251_v60  ;;  %v1253_v1 = vshll.u32 %v1244_v54, %v1251_v60 }
 0x71a   : > { %v1254_v18 = vshrl.u32 %v1236_v61, %v1252_v19  ;;  %v1257_v2 = vadd.s32 127, %v1256_v0 }
 0x71c   : > { %v1255_v3 = vor.u32 %v1254_v18, %v1253_v1  ;;  %v1258_v6 = vshll.u32 %v1257_v2, 23 }
 0x71e   : > { %v1259_v7 = vor.u32 4788187, %v1258_v6  ;;  %v1262_v11 = vcvt.s32.f32 %v1255_v3  ;;  %v2225_v6 = vld [vmem:[%s3301_s5 + $0x18] sm:$0xff] }
 0x720   : > { %v1260_v9 = vand.u32 2147483647, %v1259_v7  ;;  %v2223_v7 = vld [vmem:[%s3304_s8 + $0x8] sm:$0xff] }
 0x722   : > { %v1263_v12 = vmul.f32 %v1262_v11, %v1260_v9  ;;  %v2232_v9 = vld [vmem:[%s3306_s10 + $0x8] sm:$0xff]  ;;  %v2226_v11 = vld [vmem:[%s3302_s6 + $0x18] sm:$0xff] }
 0x724   : > { %v1264_v14 = vxor.u32 2147483648, %v1263_v12 }
 0x726   : > { %v1265_v16 = vsel %vm1182_vm15, %v1264_v14, %v1263_v12  ;;  %v2237_v12 = vld [vmem:[%s3307_s11 + $0x3] ss:$0 sm:$0xff] }
 0x727   : > { %v1268_v20 = vsel %vm1181_vm10, %v3008_v57, %v1265_v16  ;;  %v2239_v14 = vld [vmem:[%s3302_s6 + $0x20] sm:$0xff] }
 0x728   : > { %2564 = vcosq.f32 %v1268_v20  ;;  %v2238_v16 = vld [vmem:[%s3301_s5 + $0x20] sm:$0xff] }
 0x729   : > { %2566 = vsinq.f32 %v1268_v20 }
 0x732   : > { %v2565_v27 = vpop.eup %2564 }
 0x733   : > { %v2567_v28 = vpop.eup %2566  ;;  %v1280_v30 = vxor.u32 2147483648, %v2565_v27 }
 0x734   : > { %v1277_v33 = vxor.u32 2147483648, %v2567_v28 }
 0x735   : > { %v1281_v34 = vsel %vm1279_vm11, %v1280_v30, %v2567_v28 }
 0x736   : > { %v1278_v36 = vsel %vm1276_vm13, %v2565_v27, %v1277_v33 }
 0x737   : > { %v1282_v63 = vsel %vm1275_vm14, %v1278_v36, %v1281_v34 }
 0x738   : > { %v1283_v37 = vsel %vm1272_vm2, nan, %v1282_v63 }
 0x739   : > { %v1284_v38 = vmul.f32 %v1283_v37, %v1283_v37 }
 0x73b   : > { %v1290_v40 = vmul.f32 %v1288_v39, %v1284_v38  ;;  %v2222_v38 = vld [vmem:[%s3303_s7 + $0x4] sm:$0xf] }
 0x73d   : > { %v1291_v41 = vadd.f32 %v1290_v40, %v3005_v8 }
 0x73f   : > { %v2503_v42 = vpack.i.bf16 %v1291_v41, %v2645_v4  ;;  %v2508_v5 = vpack.i.bf16 %v2645_v4, %v1291_v41 }
 0x741   : > { %2504 = vrot.lane.b32.xlu0 %v2503_v42, %s3319_s16  ;;  %2499 = vrot.lane.b32.xlu1 %v2503_v42, %s3320_s26  ;;  %s2667_s16 = smov 101   ;;  %s2668_s26 = smov 74  }
 0x745   : > { %2509 = vrot.lane.b32.xlu0 %v2508_v5, %s2661_s28  ;;  %1317 = vrot.lane.b32.xlu1 %v1291_v41, %s3311_s17  ;;  %s2669_s28 = smov 83   ;;  %s2670_s17 = smov 27  }
 0x749   : > { %2519 = vrot.lane.b32.xlu0 %v2508_v5, %s3312_s18  ;;  %2514 = vrot.lane.b32.xlu1 %v2508_v5, %s2664_s20 }
 0x7b3   : > { %v2505_v57 = vpop.permute.xlu0 %2504  ;;  %v2500_v43 = vpop.permute.xlu1 %2499 }
 0x7b4   : > { %v2507_v44 = vunpack.i.h.bf16 %v2505_v57  ;;  %v2506_v45 = vunpack.i.l.bf16 %v2505_v57  ;;  %v2502_v15 = vunpack.i.h.bf16 %v2500_v43  ;;  %v2501_v46 = vunpack.i.l.bf16 %v2500_v43 }
 0x7b6   : > { %v1347_v47 = vpack.c.bf16 %v2502_v15, %v1291_v41  ;;  %v1307_v48 = vsel %vm634_vm1, %v2501_v46, %v2502_v15  ;;  %v1314_v51 = vsel %vm872_vm7, %v2506_v45, %v2507_v44  ;;  %vm1342_vm1 = vcmask 900096  }
 0x7b7   : > { %v2510_v49 = vpop.permute.xlu0 %2509  ;;  %v1318_v62 = vpop.permute.xlu1 %1317  ;;  %v1346_v50 = vpack.c.bf16 %v1307_v48, %v2645_v4  ;;  %vm1383_vm7 = vcmask 72704  }
 0x7b8   : > { %1369 = vrot.lane.b32.xlu0 %v1347_v47, %s2665_s0  ;;  %v2512_v59 = vunpack.i.h.bf16 %v2510_v49  ;;  %v2511_v52 = vunpack.i.l.bf16 %v2510_v49  ;;  %v1349_v53 = vpack.c.bf16 %v1318_v62, %v2507_v44  ;;  %v1348_v10 = vpack.c.bf16 %v1318_v62, %v1314_v51 }
 0x7b9   : > { %1367 = vrot.lane.b32.xlu1 %v1346_v50, %s2665_s0 }
 0x7ba   : > { %v1327_v19 = vsel %vm1326_vm3, %v2511_v52, %v2512_v59 }
 0x7bb   : > { %v2520_v54 = vpop.permute.xlu0 %2519  ;;  %v2515_v55 = vpop.permute.xlu1 %2514 }
 0x7bc   : > { %v2522_v31 = vunpack.i.h.bf16 %v2520_v54  ;;  %v2521_v56 = vunpack.i.l.bf16 %v2520_v54  ;;  %v2517_v58 = vunpack.i.h.bf16 %v2515_v55  ;;  %v2516_v60 = vunpack.i.l.bf16 %v2515_v55  ;;  %1373 = vrot.lane.b32.xlu0 %v1349_v53, %s2665_s0 }
 0x7bd   : > { %1371 = vrot.lane.b32.xlu1 %v1348_v10, %s2665_s0 }
 0x7be   : > { %v1350_v61 = vpack.c.bf16 %v2516_v60, %v2511_v52  ;;  %v1335_v0 = vsel %vm1334_vm4, %v2516_v60, %v2517_v58  ;;  %v1343_v18 = vsel %vm1342_vm1, %v2521_v56, %v2522_v31  ;;  %v1352_v2 = vpack.c.bf16 %v2521_v56, %v2521_v56 }
 0x7bf   : > { %v1351_v1 = vpack.c.bf16 %v1335_v0, %v1327_v19  ;;  %v1353_v3 = vpack.c.bf16 %v1343_v18, %v1343_v18 }
 0x7c1   : > { %1377 = vrot.lane.b32.xlu0 %v1351_v1, %s2665_s0  ;;  %1375 = vrot.lane.b32.xlu1 %v1350_v61, %s2665_s0 }
 0x7c5   : > { %1381 = vrot.lane.b32.xlu0 %v1353_v3, %s2665_s0  ;;  %1379 = vrot.lane.b32.xlu1 %v1352_v2, %s2665_s0 }
 0x7c9   : > { %1443 = vperm.xlu0 %2461, %v2225_v6   ;;  %1356 = vperm.xlu1 %2472, %v2223_v7  }
 0x7cd   : > { %1566 = vperm.xlu0 %2461, %v2232_v9   ;;  %1554 = vperm.xlu1 %2472, %v2226_v11  }
 0x7d1   : > { %1635 = vperm.xlu0 %2461, %v2237_v12   ;;  %1623 = vperm.xlu1 %2472, %v2235_v13  }
 0x7d5   : > { %1757 = vperm.xlu0 %2461, %v2239_v14   ;;  %1646 = vperm.xlu1 %2472, %v2238_v16  }
 0x82a   : > { %v1370_v17 = vpop.permute.xlu0 %1369 }
 0x82b   : > { %v1368_v20 = vpop.permute.xlu1 %1367 }
 0x82c   : > { %v1384_v22 = vsel %vm1383_vm7, %v1368_v20, %v1370_v17 }
 0x82d   : > { %2332 = vmatpush3.bf16.msra.mxu0 %v1384_v22 }
 0x82e   : > { %v1374_v24 = vpop.permute.xlu0 %1373  ;;  %2333 = vmatprep.subr.bf16.mxu0 %v2645_v4 }
 0x82f   : > { %v1372_v25 = vpop.permute.xlu1 %1371 }
 0x830   : > { %v1385_v27 = vsel %vm1383_vm7, %v1372_v25, %v1374_v24 }
 0x831   : > { %2334 = vmatpush3.bf16.msra.mxu0 %v1385_v27 }
 0x832   : > { %2335 = vmatprep.subr.bf16.mxu0 %v2645_v4 }
 0x833   : > { %v1378_v28 = vpop.permute.xlu0 %1377  ;;  %v1376_v30 = vpop.permute.xlu1 %1375 }
 0x834   : > { %v1386_v33 = vsel %vm1383_vm7, %v1376_v30, %v1378_v28 }
 0x835   : > { %2336 = vmatpush3.bf16.msra.mxu0 %v1386_v33 }
 0x836   : > { %2337 = vmatprep.subr.bf16.mxu0 %v2645_v4 }
 0x837   : > { %v1382_v34 = vpop.permute.xlu0 %1381  ;;  %v1380_v36 = vpop.permute.xlu1 %1379 }
 0x838   : > { %v1387_v63 = vsel %vm1383_vm7, %v1380_v36, %v1382_v34 }
 0x839   : > { %v1395_v37 = vsel %vm925_vm8, %v1387_v63, 0 }
 0x83a   : > { %2338 = vmatpush3.bf16.msra.mxu0 %v1395_v37 }
 0x83b   : > { %2361 = vmatprep.subr.bf16.mxu0 %v2645_v4 }
 0x83d   : > { %2340 = vmatmul.mubr.msk.bf16.vlgmr.msra.gmra.mrb[8].mxu0 %vm921_vm9, %v2222_v38 }
 0x83e   : > { %2363 = vmatprep.mubr.msk.bf16.mxu0 %vm2646_vm0, %v2645_v4 }
 0x848   : > { %v1357_v39 = vpop.permute.xlu1 %1356  ;;  %v1444_v5 = vpop.permute.xlu0 %1443 }
 0x910   : > { %v1431_v40 = vpop.f32.mrb[8].mxu0 }
 0x911   : > { %v3090_v41 = vadd.f32 %v1431_v40, %v1357_v39  ;;  %v2341_v42 = vpop.f32.mrb[9].mxu0 }
 0x912   : > { %v1434_v57 = vpop.f32.mrb[10].mxu0 }
 0x913   : > { %v3093_v43 = vmul.f32 %v1444_v5, %v3090_v41  ;;  %v2342_v44 = vpop.f32.mrb[11].mxu0 }
 0x915   : > { %v1450_v45 = vand.u32 2139095040, %v3093_v43  ;;  %v1447_v48 = vand.u32 2147483647, %v3093_v43  ;;  %vm1449_vm2 = vcmp.lt.s32.totalorder %v3093_v43, 0 }
 0x917   : > { %v1451_v15 = vshrl.u32 %v1450_v45, 23  ;;  %v1454_v50 = vand.u32 8388607, %v1447_v48  ;;  %vm1448_vm3 = vcmp.le.f32.partialorder %v1447_v48, 0.7853982 }
 0x919   : > { %v2227_v46 = vadd.s32 4294967169, %v1451_v15  ;;  %v1455_v19 = vor.u32 8388608, %v1454_v50 }
 0x91b   : > { %v1457_v47 = vadd.s32 1, %v2227_v46  ;;  %v1495_v17 = vshll.u32 %v1455_v19, 8 }
 0x91d   : > { %vm1458_vm5 = vcmp.gt.s32.totalorder %v1457_v47, 0 }
 0x91e   : > { %v1459_v49 = vsel %vm1458_vm5, %v1457_v47, 0 }
 0x91f   : > { %v1461_v62 = vand.u32 31, %v1459_v49  ;;  %v1460_v59 = vshrl.u32 %v1459_v49, 5 }
 0x921   : > { %v1462_v51 = vsub.s32 32, %v1461_v62  ;;  %v1464_v52 = vshll.u32 %v2647_v21, %v1461_v62  ;;  %v1467_v53 = vshll.u32 %v2648_v23, %v1461_v62  ;;  %v1470_v55 = vshll.u32 %v2649_v26, %v1461_v62 }
 0x922   : > { %v1473_v56 = vshll.u32 %v2650_v29, %v1461_v62  ;;  %v1476_v60 = vshll.u32 %v2651_v32, %v1461_v62  ;;  %vm1479_vm6 = vcmp.lt.s32.totalorder %v1460_v59, 1  ;;  %vm1482_vm15 = vcmp.lt.s32.totalorder %v1460_v59, 4 }
 0x923   : > { %v1465_v10 = vshrl.u32 %v2648_v23, %v1462_v51  ;;  %v1468_v54 = vshrl.u32 %v2649_v26, %v1462_v51  ;;  %v1471_v31 = vshrl.u32 %v2650_v29, %v1462_v51  ;;  %v1474_v58 = vshrl.u32 %v2651_v32, %v1462_v51 }
 0x924   : > { %v1477_v61 = vshrl.u32 %v2652_v35, %v1462_v51  ;;  %v1463_v11 = vshrl.u32 %v2647_v21, %v1462_v51  ;;  %vm1481_vm10 = vcmp.lt.s32.totalorder %v1460_v59, 3  ;;  %vm1480_vm11 = vcmp.lt.s32.totalorder %v1460_v59, 2 }
 0x925   : > { %v1466_v0 = vor.u32 %v1465_v10, %v1464_v52  ;;  %v1469_v1 = vor.u32 %v1468_v54, %v1467_v53  ;;  %v1472_v18 = vor.u32 %v1471_v31, %v1470_v55  ;;  %v1475_v2 = vor.u32 %v1474_v58, %v1473_v56 }
 0x926   : > { %v1478_v3 = vor.u32 %v1477_v61, %v1476_v60 }
 0x927   : > { %v1484_v6 = vsel %vm1482_vm15, %v1472_v18, 2102212464  ;;  %v1487_v7 = vsel %vm1479_vm6, %v1466_v0, %v1469_v1  ;;  %v1491_v9 = vsel %vm1479_vm6, %v1469_v1, %v1472_v18  ;;  %v1488_v12 = vsel %vm1482_vm15, %v1475_v2, 920167782 }
 0x928   : > { %v1492_v13 = vsel %vm1482_vm15, %v1478_v3, 1326507024  ;;  %v1489_v14 = vsel %vm1481_vm10, %v1472_v18, %v1488_v12  ;;  %v1483_v20 = vsel %vm1479_vm6, %v1463_v11, %v1466_v0  ;;  %v1485_v22 = vsel %vm1481_vm10, %v1469_v1, %v1484_v6 }
 0x929   : > { %v1493_v16 = vsel %vm1481_vm10, %v1475_v2, %v1492_v13  ;;  %v1490_v24 = vsel %vm1480_vm11, %v1487_v7, %v1489_v14  ;;  %v1486_v34 = vsel %vm1480_vm11, %v1483_v20, %v1485_v22  ;;  %vm1539_vm6 = vweird.f32 %v3093_v43  ;;  %v1555_v14 = vpop.permute.xlu1 %1554 }
 0x92a   : > { %v1494_v25 = vsel %vm1480_vm11, %v1491_v9, %v1493_v16  ;;  %v3113_v30 = vmul.u32.u64.low %v1495_v17, %v1490_v24  ;;  %v3114_v33 = vmul.u32.u64.high %v1495_v17, %v1490_v24, %v3113_v30  ;;  %v1502_v63 = vmul.u32 %v1495_v17, %v1486_v34  ;;  %v2231_v24 = vld [vmem:[%s3305_s9 + $0x4] sm:$0xf] }
 0x92b   : > { %v3110_v27 = vmul.u32.u64.low %v1495_v17, %v1494_v25  ;;  %v3111_v28 = vmul.u32.u64.high %v1495_v17, %v1494_v25, %v3110_v27 }
 0x92c   : > { %v1505_v36 = vadd.s32 1, %v3114_v33 }
 0x92d   : > { %vm1504_vm13 = vc.u32 %v3111_v28, %v3113_v30  ;;  %v1503_v47 = vadd.s32 %v3113_v30, %v3111_v28  ;;  %v1624_v25 = vpop.permute.xlu1 %1623 }
 0x92e   : > { %v1506_v37 = vsel %vm1504_vm13, %v1505_v36, %v3114_v33  ;;  %v1626_v34 = vmul.f32 %v1624_v25, %v3005_v8 }
 0x92f   : > { %v1507_v38 = vadd.s32 %v1506_v37, %v1502_v63 }
 0x931   : > { %v1508_v39 = vadd.s32 536870912, %v1507_v38 }
 0x933   : > { %v1509_v40 = vshrl.u32 %v1508_v39, 30 }
 0x935   : > { %v1510_v42 = vshll.u32 %v1509_v40, 30  ;;  %v1533_v56 = vsub.s32 4, %v1509_v40 }
 0x937   : > { %v1511_v5 = vsub.s32 %v1507_v38, %v1510_v42  ;;  %v1534_v61 = vsel %vm1449_vm2, %v1533_v56, %v1509_v40  ;;  %v1647_v38 = vpop.permute.xlu1 %1646 }
 0x938   : > { %v1536_v0 = vsel %vm1448_vm3, 0, %v1534_v61 }
 0x939   : > { %v1513_v57 = vsub.s32 0, %v1511_v5  ;;  %v1540_v1 = vadd.s32 3, %v1536_v0 }
 0x93b   : > { %v2228_v44 = vmin.u32 %v1513_v57, %v1511_v5  ;;  %v1541_v18 = vand.u32 3, %v1540_v1 }
 0x93d   : > { %v1515_v45 = vclz %v2228_v44  ;;  %vm1546_vm4 = vcmp.eq.s32.totalorder %v1541_v18, 2  ;;  %vm1543_vm7 = vcmp.eq.s32.totalorder %v1541_v18, 0  ;;  %vm1542_vm5 = vcmp.lt.s32.totalorder %v1541_v18, 2 }
 0x93f   : > { %v2229_v15 = vadd.s32 4294967294, %v1515_v45 }
 0x941   : > { %vm2230_vm14 = vcmp.lt.s32.totalorder %v2229_v15, 0 }
 0x942   : > { %v1518_v46 = vsel %vm2230_vm14, 0, %v2229_v15 }
 0x943   : > { %v1519_v49 = vsub.s32 32, %v1518_v46  ;;  %v1523_v62 = vsub.s32 4294967266, %v1518_v46  ;;  %v1520_v50 = vshll.u32 %v1511_v5, %v1518_v46 }
 0x945   : > { %v1521_v51 = vshrl.u32 %v1503_v47, %v1519_v49  ;;  %v1524_v59 = vadd.s32 127, %v1523_v62 }
 0x947   : > { %v1522_v52 = vor.u32 %v1521_v51, %v1520_v50  ;;  %v1525_v53 = vshll.u32 %v1524_v59, 23 }
 0x949   : > { %v1526_v10 = vor.u32 4788187, %v1525_v53  ;;  %v1529_v55 = vcvt.s32.f32 %v1522_v52 }
 0x94b   : > { %v1527_v54 = vand.u32 2147483647, %v1526_v10 }
 0x94d   : > { %v1530_v31 = vmul.f32 %v1529_v55, %v1527_v54 }
 0x94f   : > { %v1531_v58 = vxor.u32 2147483648, %v1530_v31 }
 0x951   : > { %v1532_v60 = vsel %vm1449_vm2, %v1531_v58, %v1530_v31 }
 0x952   : > { %v1535_v19 = vsel %vm1448_vm3, %v3093_v43, %v1532_v60  ;;  %v1567_v43 = vpop.permute.xlu0 %1566 }
 0x953   : > { %2568 = vcosq.f32 %v1535_v19 }
 0x954   : > { %2570 = vsinq.f32 %v1535_v19 }
 0x956   : > { %v1636_v30 = vpop.permute.xlu0 %1635 }
 0x95d   : > { %v2569_v2 = vpop.eup %2568 }
 0x95e   : > { %v2571_v3 = vpop.eup %2570  ;;  %v1547_v6 = vxor.u32 2147483648, %v2569_v2 }
 0x95f   : > { %v1544_v7 = vxor.u32 2147483648, %v2571_v3 }
 0x960   : > { %v1548_v9 = vsel %vm1546_vm4, %v1547_v6, %v2571_v3 }
 0x961   : > { %v1545_v11 = vsel %vm1543_vm7, %v2569_v2, %v1544_v7 }
 0x962   : > { %v1549_v48 = vsel %vm1542_vm5, %v1545_v11, %v1548_v9 }
 0x963   : > { %v1550_v12 = vsel %vm1539_vm6, nan, %v1549_v48 }
 0x964   : > { %v1551_v13 = vmul.f32 %v1550_v12, %v1550_v12 }
 0x966   : > { %v1557_v16 = vmul.f32 %v1555_v14, %v1551_v13 }
 0x968   : > { %v1558_v17 = vadd.f32 %v1557_v16, %v3090_v41 }
 0x96a   : > { %v1561_v20 = vpack.c.bf16 %v1558_v17, %v1558_v17 }
 0x96c   : > { %v1573_v22 = vsel %vm925_vm8, %v1561_v20, 0 }
 0x96d   : > { %2344 = vmatpush3.bf16.msra.mxu1 %v1573_v22 }
 0x96e   : > { %2349 = vmatprep.subr.bf16.mxu1 %v2645_v4 }
 0x970   : > { %2346 = vmatmul.mubr.msk.bf16.vlgmr.msra.gmra.mrb[8].mxu1 %vm1099_vm12, %v2231_v24 }
 0x971   : > { %2357 = vmatprep.mubr.msk.bf16.mxu1 %vm2646_vm0, %v2645_v4 }
 0xa43   : > { %v1609_v27 = vpop.f32.mrb[8].mxu1 }
 0xa44   : > { %v1610_v28 = vadd.f32 %v1609_v27, %v1567_v43  ;;  %v2347_v41 = vpop.f32.mrb[9].mxu1 }
 0xa45   : > { %v1612_v33 = vpop.f32.mrb[10].mxu1 }
 0xa46   : > { %v1638_v36 = vmul.f32 %v1636_v30, %v1610_v28  ;;  %v2348_v63 = vpop.f32.mrb[11].mxu1 }
 0xa48   : > { %v3135_v37 = vadd.f32 %v1638_v36, %v1626_v34 }
 0xa4a   : > { %v3138_v39 = vmul.f32 %v1647_v38, %v3135_v37 }
 0xa4c   : > { %v1653_v40 = vand.u32 2139095040, %v3138_v39  ;;  %v1650_v44 = vand.u32 2147483647, %v3138_v39  ;;  %vm1652_vm3 = vcmp.lt.s32.totalorder %v3138_v39, 0 }
 0xa4e   : > { %v1654_v42 = vshrl.u32 %v1653_v40, 23  ;;  %v1657_v8 = vand.u32 8388607, %v1650_v44  ;;  %vm1651_vm4 = vcmp.le.f32.partialorder %v1650_v44, 0.7853982 }
 0xa50   : > { %v2240_v5 = vadd.s32 4294967169, %v1654_v42  ;;  %v1658_v31 = vor.u32 8388608, %v1657_v8 }
 0xa52   : > { %v1660_v57 = vadd.s32 1, %v2240_v5  ;;  %v1698_v11 = vshll.u32 %v1658_v31, 8 }
 0xa54   : > { %vm1661_vm0 = vcmp.gt.s32.totalorder %v1660_v57, 0 }
 0xa55   : > { %v1662_v45 = vsel %vm1661_vm0, %v1660_v57, 0  ;;  %vm1742_vm0 = vweird.f32 %v3138_v39 }
 0xa56   : > { %v1664_v15 = vand.u32 31, %v1662_v45  ;;  %v1663_v47 = vshrl.u32 %v1662_v45, 5 }
 0xa58   : > { %v1665_v46 = vsub.s32 32, %v1664_v15  ;;  %v1667_v49 = vshll.u32 %v2647_v21, %v1664_v15  ;;  %v1670_v62 = vshll.u32 %v2648_v23, %v1664_v15  ;;  %v1673_v59 = vshll.u32 %v2649_v26, %v1664_v15 }
 0xa59   : > { %v1676_v53 = vshll.u32 %v2650_v29, %v1664_v15  ;;  %v1679_v54 = vshll.u32 %v2651_v32, %v1664_v15  ;;  %vm1682_vm15 = vcmp.lt.s32.totalorder %v1663_v47, 1  ;;  %vm1685_vm10 = vcmp.lt.s32.totalorder %v1663_v47, 4 }
 0xa5a   : > { %v1668_v50 = vshrl.u32 %v2648_v23, %v1665_v46  ;;  %v1671_v51 = vshrl.u32 %v2649_v26, %v1665_v46  ;;  %v1674_v52 = vshrl.u32 %v2650_v29, %v1665_v46  ;;  %v1677_v10 = vshrl.u32 %v2651_v32, %v1665_v46 }
 0xa5b   : > { %v1680_v55 = vshrl.u32 %v2652_v35, %v1665_v46  ;;  %v1666_v2 = vshrl.u32 %v2647_v21, %v1665_v46  ;;  %vm1684_vm11 = vcmp.lt.s32.totalorder %v1663_v47, 3  ;;  %vm1683_vm13 = vcmp.lt.s32.totalorder %v1663_v47, 2 }
 0xa5c   : > { %v1669_v56 = vor.u32 %v1668_v50, %v1667_v49  ;;  %v1672_v58 = vor.u32 %v1671_v51, %v1670_v62  ;;  %v1675_v60 = vor.u32 %v1674_v52, %v1673_v59  ;;  %v1678_v61 = vor.u32 %v1677_v10, %v1676_v53 }
 0xa5d   : > { %v1681_v19 = vor.u32 %v1680_v55, %v1679_v54 }
 0xa5e   : > { %v1687_v0 = vsel %vm1685_vm10, %v1675_v60, 2102212464  ;;  %v1690_v1 = vsel %vm1682_vm15, %v1669_v56, %v1672_v58  ;;  %v1694_v18 = vsel %vm1682_vm15, %v1672_v58, %v1675_v60  ;;  %v1691_v3 = vsel %vm1685_vm10, %v1678_v61, 920167782 }
 0xa5f   : > { %v1695_v6 = vsel %vm1685_vm10, %v1681_v19, 1326507024  ;;  %v1692_v7 = vsel %vm1684_vm11, %v1675_v60, %v1691_v3  ;;  %v1686_v48 = vsel %vm1682_vm15, %v1666_v2, %v1669_v56  ;;  %v1688_v12 = vsel %vm1684_vm11, %v1672_v58, %v1687_v0 }
 0xa60   : > { %v1696_v9 = vsel %vm1684_vm11, %v1678_v61, %v1695_v6  ;;  %v1693_v13 = vsel %vm1683_vm13, %v1690_v1, %v1692_v7  ;;  %v1689_v24 = vsel %vm1683_vm13, %v1686_v48, %v1688_v12  ;;  %v1758_v6 = vpop.permute.xlu0 %1757  ;;  %vm1777_vm15 = vcmask 973824  }
 0xa61   : > { %v1697_v14 = vsel %vm1683_vm13, %v1694_v18, %v1696_v9  ;;  %v3158_v20 = vmul.u32.u64.low %v1698_v11, %v1693_v13  ;;  %v3159_v22 = vmul.u32.u64.high %v1698_v11, %v1693_v13, %v3158_v20  ;;  %v1705_v25 = vmul.u32 %v1698_v11, %v1689_v24 }
 0xa62   : > { %v3155_v16 = vmul.u32.u64.low %v1698_v11, %v1697_v14  ;;  %v3156_v17 = vmul.u32.u64.high %v1698_v11, %v1697_v14, %v3155_v16  ;;  %vm1797_vm10 = vcmask 752640   ;;  %vm1805_vm11 = vcmask 678912  }
 0xa63   : > { %v1708_v43 = vadd.s32 1, %v3159_v22  ;;  %vm1813_vm13 = vcmask 605184  }
 0xa64   : > { %vm1707_vm14 = vc.u32 %v3156_v17, %v3158_v20  ;;  %v1706_v5 = vadd.s32 %v3158_v20, %v3156_v17 }
 0xa65   : > { %v1709_v27 = vsel %vm1707_vm14, %v1708_v43, %v3159_v22 }
 0xa66   : > { %v1710_v28 = vadd.s32 %v1709_v27, %v1705_v25 }
 0xa68   : > { %v1711_v41 = vadd.s32 536870912, %v1710_v28 }
 0xa6a   : > { %v1712_v30 = vshrl.u32 %v1711_v41, 30 }
 0xa6c   : > { %v1713_v33 = vshll.u32 %v1712_v30, 30  ;;  %v1736_v52 = vsub.s32 4, %v1712_v30 }
 0xa6e   : > { %v1714_v34 = vsub.s32 %v1710_v28, %v1713_v33  ;;  %v1737_v54 = vsel %vm1652_vm3, %v1736_v52, %v1712_v30  ;;  %v2257_v52 = vld [vmem:[%s3307_s11 + $0x4] ss:$0 sm:$0xff] }
 0xa6f   : > { %v1739_v31 = vsel %vm1651_vm4, 0, %v1737_v54 }
 0xa70   : > { %v1716_v36 = vsub.s32 0, %v1714_v34  ;;  %v1743_v56 = vadd.s32 3, %v1739_v31 }
 0xa72   : > { %v2241_v63 = vmin.u32 %v1716_v36, %v1714_v34  ;;  %v1744_v58 = vand.u32 3, %v1743_v56 }
 0xa74   : > { %v1718_v38 = vclz %v2241_v63  ;;  %vm1749_vm7 = vcmp.eq.s32.totalorder %v1744_v58, 2  ;;  %vm1746_vm5 = vcmp.eq.s32.totalorder %v1744_v58, 0  ;;  %vm1745_vm6 = vcmp.lt.s32.totalorder %v1744_v58, 2 }
 0xa76   : > { %v2242_v40 = vadd.s32 4294967294, %v1718_v38 }
 0xa78   : > { %vm2243_vm2 = vcmp.lt.s32.totalorder %v2242_v40, 0 }
 0xa79   : > { %v1721_v42 = vsel %vm2243_vm2, 0, %v2242_v40 }
 0xa7a   : > { %v1722_v57 = vsub.s32 32, %v1721_v42  ;;  %v1726_v45 = vsub.s32 4294967266, %v1721_v42  ;;  %v1723_v15 = vshll.u32 %v1714_v34, %v1721_v42 }
 0xa7c   : > { %v1724_v8 = vshrl.u32 %v1706_v5, %v1722_v57  ;;  %v1727_v46 = vadd.s32 127, %v1726_v45 }
 0xa7e   : > { %v1725_v47 = vor.u32 %v1724_v8, %v1723_v15  ;;  %v1728_v49 = vshll.u32 %v1727_v46, 23 }
 0xa80   : > { %v1729_v62 = vor.u32 4788187, %v1728_v49  ;;  %v1732_v51 = vcvt.s32.f32 %v1725_v47  ;;  %v2247_v49 = vld [vmem:[%s3301_s5 + $0x28] sm:$0xff] }
 0xa82   : > { %v1730_v50 = vand.u32 2147483647, %v1729_v62  ;;  %v2245_v62 = vld [vmem:[%s3304_s8 + $0x10] sm:$0xff] }
 0xa84   : > { %v1733_v59 = vmul.f32 %v1732_v51, %v1730_v50  ;;  %v2254_v50 = vld [vmem:[%s3306_s10 + $0x10] sm:$0xff]  ;;  %v2248_v51 = vld [vmem:[%s3302_s6 + $0x28] sm:$0xff] }
 0xa86   : > { %v1734_v53 = vxor.u32 2147483648, %v1733_v59 }
 0xa88   : > { %v1735_v10 = vsel %vm1652_vm3, %v1734_v53, %v1733_v59  ;;  %v2259_v59 = vld [vmem:[%s3307_s11 + $0x5] ss:$0 sm:$0xff] }
 0xa89   : > { %v1738_v55 = vsel %vm1651_vm4, %v3138_v39, %v1735_v10 }
 0xa8a   : > { %2572 = vcosq.f32 %v1738_v55 }
 0xa8b   : > { %2574 = vsinq.f32 %v1738_v55 }
 0xa94   : > { %v2573_v60 = vpop.eup %2572 }
 0xa95   : > { %v2575_v61 = vpop.eup %2574  ;;  %v1750_v19 = vxor.u32 2147483648, %v2573_v60 }
 0xa96   : > { %v1747_v0 = vxor.u32 2147483648, %v2575_v61 }
 0xa97   : > { %v1751_v1 = vsel %vm1749_vm7, %v1750_v19, %v2575_v61 }
 0xa98   : > { %v1748_v18 = vsel %vm1746_vm5, %v2573_v60, %v1747_v0 }
 0xa99   : > { %v1752_v44 = vsel %vm1745_vm6, %v1748_v18, %v1751_v1 }
 0xa9a   : > { %v1753_v2 = vsel %vm1742_vm0, nan, %v1752_v44  ;;  %v2244_v44 = vld [vmem:[%s3303_s7 + $0x8] sm:$0xf] }
 0xa9b   : > { %v1754_v3 = vmul.f32 %v1753_v2, %v1753_v2 }
 0xa9d   : > { %v1760_v7 = vmul.f32 %v1758_v6, %v1754_v3 }
 0xa9f   : > { %v1761_v9 = vadd.f32 %v1760_v7, %v3135_v37 }
 0xaa1   : > { %v2528_v11 = vpack.i.bf16 %v1761_v9, %v2645_v4  ;;  %v2533_v48 = vpack.i.bf16 %v2645_v4, %v1761_v9 }
 0xaa3   : > { %2529 = vrot.lane.b32.xlu0 %v2528_v11, %s3321_s15  ;;  %2524 = vrot.lane.b32.xlu1 %v2528_v11, %s3322_s19 }
 0xaa7   : > { %2534 = vrot.lane.b32.xlu0 %v2533_v48, %s2666_s29  ;;  %1788 = vrot.lane.b32.xlu1 %v1761_v9, %s2667_s16  ;;  %s402_s16 = sand.u32 1, %s2634_s22   ;;  %s2671_s29 = smov [#allocation3]  }
 0xaa8   : > { %s2113_s19 = scalar_lea.sflag [#allocation4], %s402_s16 }
 0xaab   : > { %2544 = vrot.lane.b32.xlu0 %v2533_v48, %s2668_s26  ;;  %2539 = vrot.lane.b32.xlu1 %v2533_v48, %s2669_s28  ;;  %s2189_s26 = sshll.u32 %s402_s16, 3  ;;  %s2261_s28 = sshll.u32 %s2758_s25, 7 }
 0xaac   : > { %s3254_s15 = scalar_lea.hbm %s3308_s12, %s2261_s28 }
 0xb15   : > { %v2530_v39 = vpop.permute.xlu0 %2529  ;;  %v2525_v12 = vpop.permute.xlu1 %2524 }
 0xb16   : > { %v2532_v13 = vunpack.i.h.bf16 %v2530_v39  ;;  %v2531_v14 = vunpack.i.l.bf16 %v2530_v39  ;;  %v2527_v16 = vunpack.i.h.bf16 %v2525_v12  ;;  %v2526_v17 = vunpack.i.l.bf16 %v2525_v12 }
 0xb18   : > { %v1818_v20 = vpack.c.bf16 %v2527_v16, %v1761_v9  ;;  %v1778_v22 = vsel %vm1777_vm15, %v2526_v17, %v2527_v16  ;;  %v1785_v27 = vsel %vm1342_vm1, %v2531_v14, %v2532_v13  ;;  %vm1854_vm1 = vcmask 220160  }
 0xb19   : > { %v2535_v24 = vpop.permute.xlu0 %2534  ;;  %v1789_v43 = vpop.permute.xlu1 %1788  ;;  %v1817_v25 = vpack.c.bf16 %v1778_v22, %v2645_v4 }
 0xb1a   : > { %1840 = vrot.lane.b32.xlu0 %v1818_v20, %s2670_s17  ;;  %v2537_v28 = vunpack.i.h.bf16 %v2535_v24  ;;  %v2536_v41 = vunpack.i.l.bf16 %v2535_v24  ;;  %v1820_v30 = vpack.c.bf16 %v1789_v43, %v2532_v13  ;;  %v1819_v33 = vpack.c.bf16 %v1789_v43, %v1785_v27 }
 0xb1b   : > { %1838 = vrot.lane.b32.xlu1 %v1817_v25, %s2670_s17 }
 0xb1c   : > { %v1798_v57 = vsel %vm1797_vm10, %v2536_v41, %v2537_v28 }
 0xb1d   : > { %v2545_v34 = vpop.permute.xlu0 %2544  ;;  %v2540_v36 = vpop.permute.xlu1 %2539 }
 0xb1e   : > { %v2547_v63 = vunpack.i.h.bf16 %v2545_v34  ;;  %v2546_v38 = vunpack.i.l.bf16 %v2545_v34  ;;  %v2542_v40 = vunpack.i.h.bf16 %v2540_v36  ;;  %v2541_v42 = vunpack.i.l.bf16 %v2540_v36  ;;  %1844 = vrot.lane.b32.xlu0 %v1820_v30, %s2670_s17 }
 0xb1f   : > { %1842 = vrot.lane.b32.xlu1 %v1819_v33, %s2670_s17 }
 0xb20   : > { %v1821_v5 = vpack.c.bf16 %v2541_v42, %v2536_v41  ;;  %v1806_v45 = vsel %vm1805_vm11, %v2541_v42, %v2542_v40  ;;  %v1814_v8 = vsel %vm1813_vm13, %v2546_v38, %v2547_v63  ;;  %v1823_v46 = vpack.c.bf16 %v2546_v38, %v2546_v38 }
 0xb21   : > { %v1822_v15 = vpack.c.bf16 %v1806_v45, %v1798_v57  ;;  %v1824_v47 = vpack.c.bf16 %v1814_v8, %v1814_v8 }
 0xb23   : > { %1848 = vrot.lane.b32.xlu0 %v1822_v15, %s2670_s17  ;;  %1846 = vrot.lane.b32.xlu1 %v1821_v5, %s2670_s17 }
 0xb27   : > { %1852 = vrot.lane.b32.xlu0 %v1824_v47, %s2670_s17  ;;  %1850 = vrot.lane.b32.xlu1 %v1823_v46, %s2670_s17  ;;  %s404_s17 = scalar_lea.vmem [#allocation3], %s2189_s26  ;;  %s2584_s26 = sshll.u32 %s2671_s29, 4  ;;  %s2585_s26 = int_to_ptr.vmem [resolvable:$false] %s2584_s26 }
 0xb28   : > { %s2126_s18 = sshll.u32 %s404_s17, 4  ;;  %s2586_s1 = scalar_lea.vmem %s2585_s26, 256  ;;  %s3256_s18 = int_to_ptr.vmem [resolvable:$true] %s2126_s18 }
 0xb29   : > { %s2580_s25 = scalar_lea.vmem %s3256_s18, 128  ;;  %p2587_p0 = scmp.lt.s32.totalorder %s3256_s18, %s2585_s26 }
 0xb2a   : > { %p2581_p11 = scmp.ne.s32.totalorder %s3256_s18, %s2580_s25  ;;  %p2588_p1 = scmp.lt.s32.totalorder %s2586_s1, %s2580_s25 }
 0xb2b   : > { %1914 = vperm.xlu0 %2461, %v2247_v49   ;;  %1827 = vperm.xlu1 %2472, %v2245_v62  }
 0xb2c   : > { %p2582_p12 = pnand %p2581_p11, %p2775_p5  ;;  %p2589_p2 = por %p2588_p1, %p2587_p0 }
 0xb2e   : > { %p2583_p13 = pneg %p2582_p12 }
 0xb2f   : > { %2037 = vperm.xlu0 %2461, %v2254_v50   ;;  %2025 = vperm.xlu1 %2472, %v2248_v51  }
 0xb30   : > { %p2590_p3 = pnand %p2589_p2, %p2583_p13 }
 0xb33   : > { %2106 = vperm.xlu0 %2461, %v2259_v59   ;;  %2094 = vperm.xlu1 %2472, %v2257_v52  }
 0xb8c   : > { %v1841_v53 = vpop.permute.xlu0 %1840 }
 0xb8d   : > { %v1839_v10 = vpop.permute.xlu1 %1838 }
 0xb8e   : > { %v1855_v54 = vsel %vm1854_vm1, %v1839_v10, %v1841_v53 }
 0xb8f   : > { %2350 = vmatpush3.bf16.msra.mxu1 %v1855_v54 }
 0xb90   : > { %v1845_v55 = vpop.permute.xlu0 %1844  ;;  %2351 = vmatprep.subr.bf16.mxu1 %v2645_v4 }
 0xb91   : > { %v1843_v31 = vpop.permute.xlu1 %1842 }
 0xb92   : > { %v1856_v56 = vsel %vm1854_vm1, %v1843_v31, %v1845_v55 }
 0xb93   : > { %2352 = vmatpush3.bf16.msra.mxu1 %v1856_v56 }
 0xb94   : > { %2353 = vmatprep.subr.bf16.mxu1 %v2645_v4 }
 0xb95   : > { %v1849_v58 = vpop.permute.xlu0 %1848  ;;  %v1847_v60 = vpop.permute.xlu1 %1846 }
 0xb96   : > { %v1857_v61 = vsel %vm1854_vm1, %v1847_v60, %v1849_v58 }
 0xb97   : > { %2354 = vmatpush3.bf16.msra.mxu1 %v1857_v61 }
 0xb98   : > { %2355 = vmatprep.subr.bf16.mxu1 %v2645_v4 }
 0xb99   : > { %v1853_v19 = vpop.permute.xlu0 %1852  ;;  %v1851_v0 = vpop.permute.xlu1 %1850 }
 0xb9a   : > { %v1858_v1 = vsel %vm1854_vm1, %v1851_v0, %v1853_v19 }
 0xb9b   : > { %v1866_v18 = vsel %vm925_vm8, %v1858_v1, 0 }
 0xb9c   : > { %2356 = vmatpush3.bf16.msra.mxu1 %v1866_v18 }
 0xb9f   : > { %2358 = vmatmul.mubr.msk.bf16.vlgmr.msra.gmra.mrb[12].mxu1 %vm921_vm9, %v2244_v44 }
 0xbaa   : > { %v1828_v2 = vpop.permute.xlu1 %1827  ;;  %v1915_v9 = vpop.permute.xlu0 %1914 }
 0xc72   : > { %v1902_v3 = vpop.f32.mrb[12].mxu1 }
 0xc73   : > { %v3207_v6 = vadd.f32 %v1902_v3, %v1828_v2  ;;  %v2359_v7 = vpop.f32.mrb[13].mxu1 }
 0xc74   : > { %v1905_v4 = vpop.f32.mrb[14].mxu1 }
 0xc75   : > { %v3210_v11 = vmul.f32 %v1915_v9, %v3207_v6  ;;  %v2360_v48 = vpop.f32.mrb[15].mxu1 }
 0xc77   : > { %v1921_v39 = vand.u32 2139095040, %v3210_v11  ;;  %v1918_v16 = vand.u32 2147483647, %v3210_v11  ;;  %vm1920_vm6 = vcmp.lt.s32.totalorder %v3210_v11, 0  ;;  %vm2010_vm13 = vweird.f32 %v3210_v11 }
 0xc79   : > { %v1922_v12 = vshrl.u32 %v1921_v39, 23  ;;  %v1925_v22 = vand.u32 8388607, %v1918_v16  ;;  %vm1919_vm0 = vcmp.le.f32.partialorder %v1918_v16, 0.7853982 }
 0xc7b   : > { %v2249_v13 = vadd.s32 4294967169, %v1922_v12  ;;  %v1926_v40 = vor.u32 8388608, %v1925_v22 }
 0xc7d   : > { %v1928_v14 = vadd.s32 1, %v2249_v13 }
 0xc7f   : > { %vm1929_vm14 = vcmp.gt.s32.totalorder %v1928_v14, 0 }
 0xc80   : > { %v1930_v17 = vsel %vm1929_vm14, %v1928_v14, 0 }
 0xc81   : > { %v1932_v20 = vand.u32 31, %v1930_v17  ;;  %v1931_v43 = vshrl.u32 %v1930_v17, 5 }
 0xc83   : > { %v1933_v24 = vsub.s32 32, %v1932_v20  ;;  %v1935_v25 = vshll.u32 %v2647_v21, %v1932_v20  ;;  %v1938_v27 = vshll.u32 %v2648_v23, %v1932_v20  ;;  %v1941_v30 = vshll.u32 %v2649_v26, %v1932_v20 }
 0xc84   : > { %v1944_v34 = vshll.u32 %v2650_v29, %v1932_v20  ;;  %v1947_v63 = vshll.u32 %v2651_v32, %v1932_v20  ;;  %vm1950_vm9 = vcmp.lt.s32.totalorder %v1931_v43, 1  ;;  %vm1953_vm2 = vcmp.lt.s32.totalorder %v1931_v43, 4 }
 0xc85   : > { %v1936_v28 = vshrl.u32 %v2648_v23, %v1933_v24  ;;  %v1939_v41 = vshrl.u32 %v2649_v26, %v1933_v24  ;;  %v1942_v33 = vshrl.u32 %v2650_v29, %v1933_v24  ;;  %v1945_v36 = vshrl.u32 %v2651_v32, %v1933_v24 }
 0xc86   : > { %v1948_v38 = vshrl.u32 %v2652_v35, %v1933_v24  ;;  %v1934_v46 = vshrl.u32 %v2647_v21, %v1933_v24  ;;  %vm1952_vm3 = vcmp.lt.s32.totalorder %v1931_v43, 3  ;;  %vm1951_vm4 = vcmp.lt.s32.totalorder %v1931_v43, 2 }
 0xc87   : > { %v1937_v42 = vor.u32 %v1936_v28, %v1935_v25  ;;  %v1940_v5 = vor.u32 %v1939_v41, %v1938_v27  ;;  %v1943_v57 = vor.u32 %v1942_v33, %v1941_v30  ;;  %v1946_v45 = vor.u32 %v1945_v36, %v1944_v34 }
 0xc88   : > { %v1949_v23 = vor.u32 %v1948_v38, %v1947_v63  ;;  %v1966_v35 = vshll.u32 %v1926_v40, 8 }
 0xc89   : > { %v1955_v15 = vsel %vm1953_vm2, %v1943_v57, 2102212464  ;;  %v1958_v26 = vsel %vm1950_vm9, %v1937_v42, %v1940_v5  ;;  %v1962_v8 = vsel %vm1950_vm9, %v1940_v5, %v1943_v57  ;;  %v1959_v29 = vsel %vm1953_vm2, %v1946_v45, 920167782 }
 0xc8a   : > { %v1963_v47 = vsel %vm1953_vm2, %v1949_v23, 1326507024  ;;  %v1960_v32 = vsel %vm1952_vm3, %v1943_v57, %v1959_v29  ;;  %v1954_v62 = vsel %vm1950_vm9, %v1934_v46, %v1937_v42  ;;  %v1956_v50 = vsel %vm1952_vm3, %v1940_v5, %v1955_v15  ;;  %v2026_v23 = vpop.permute.xlu1 %2025  ;;  %v2253_v29 = vld [vmem:[%s3305_s9 + $0x8] sm:$0xf] }
 0xc8b   : > { %v1964_v49 = vsel %vm1952_vm3, %v1946_v45, %v1963_v47  ;;  %v1961_v51 = vsel %vm1951_vm4, %v1958_v26, %v1960_v32  ;;  %v1957_v55 = vsel %vm1951_vm4, %v1954_v62, %v1956_v50 }
 0xc8c   : > { %v1965_v59 = vsel %vm1951_vm4, %v1962_v8, %v1964_v49  ;;  %v3230_v10 = vmul.u32.u64.low %v1966_v35, %v1961_v51  ;;  %v3231_v54 = vmul.u32.u64.high %v1966_v35, %v1961_v51, %v3230_v10  ;;  %v1973_v31 = vmul.u32 %v1966_v35, %v1957_v55 }
 0xc8d   : > { %v3227_v52 = vmul.u32.u64.low %v1966_v35, %v1965_v59  ;;  %v3228_v53 = vmul.u32.u64.high %v1966_v35, %v1965_v59, %v3227_v52 }
 0xc8e   : > { %v1976_v21 = vadd.s32 1, %v3231_v54  ;;  %v2095_v47 = vpop.permute.xlu1 %2094 }
 0xc8f   : > { %vm1975_vm7 = vc.u32 %v3228_v53, %v3230_v10  ;;  %v1974_v7 = vadd.s32 %v3230_v10, %v3228_v53  ;;  %v2097_v50 = vmul.f32 %v2095_v47, %v3135_v37 }
 0xc90   : > { %v1977_v56 = vsel %vm1975_vm7, %v1976_v21, %v3231_v54 }
 0xc91   : > { %v1978_v58 = vadd.s32 %v1977_v56, %v1973_v31 }
 0xc93   : > { %v1979_v60 = vadd.s32 536870912, %v1978_v58 }
 0xc95   : > { %v1980_v61 = vshrl.u32 %v1979_v60, 30 }
 0xc97   : > { %v1981_v19 = vshll.u32 %v1980_v61, 30  ;;  %v2004_v43 = vsub.s32 4, %v1980_v61 }
 0xc99   : > { %v1982_v0 = vsub.s32 %v1978_v58, %v1981_v19  ;;  %v2005_v28 = vsel %vm1920_vm6, %v2004_v43, %v1980_v61 }
 0xc9a   : > { %v2007_v30 = vsel %vm1919_vm0, 0, %v2005_v28 }
 0xc9b   : > { %v1984_v1 = vsub.s32 0, %v1982_v0  ;;  %v2011_v33 = vadd.s32 3, %v2007_v30 }
 0xc9d   : > { %v2250_v18 = vmin.u32 %v1984_v1, %v1982_v0  ;;  %v2012_v34 = vand.u32 3, %v2011_v33 }
 0xc9f   : > { %v1986_v44 = vclz %v2250_v18  ;;  %vm2017_vm15 = vcmp.eq.s32.totalorder %v2012_v34, 2  ;;  %vm2014_vm10 = vcmp.eq.s32.totalorder %v2012_v34, 0  ;;  %vm2013_vm11 = vcmp.lt.s32.totalorder %v2012_v34, 2 }
 0xca1   : > { %v2251_v2 = vadd.s32 4294967294, %v1986_v44 }
 0xca3   : > { %vm2252_vm5 = vcmp.lt.s32.totalorder %v2251_v2, 0 }
 0xca4   : > { %v1989_v3 = vsel %vm2252_vm5, 0, %v2251_v2 }
 0xca5   : > { %v1990_v9 = vsub.s32 32, %v1989_v3  ;;  %v1994_v4 = vsub.s32 4294967266, %v1989_v3  ;;  %v1991_v48 = vshll.u32 %v1982_v0, %v1989_v3 }
 0xca7   : > { %v1992_v39 = vshrl.u32 %v1974_v7, %v1990_v9  ;;  %v1995_v12 = vadd.s32 127, %v1994_v4 }
 0xca9   : > { %v1993_v13 = vor.u32 %v1992_v39, %v1991_v48  ;;  %v1996_v14 = vshll.u32 %v1995_v12, 23 }
 0xcab   : > { %v1997_v17 = vor.u32 4788187, %v1996_v14  ;;  %v2000_v22 = vcvt.s32.f32 %v1993_v13 }
 0xcad   : > { %v1998_v20 = vand.u32 2147483647, %v1997_v17 }
 0xcaf   : > { %v2001_v24 = vmul.f32 %v2000_v22, %v1998_v20 }
 0xcb1   : > { %v2002_v25 = vxor.u32 2147483648, %v2001_v24 }
 0xcb3   : > { %v2003_v27 = vsel %vm1920_vm6, %v2002_v25, %v2001_v24 }
 0xcb4   : > { %v2006_v41 = vsel %vm1919_vm0, %v3210_v11, %v2003_v27  ;;  %v2038_v11 = vpop.permute.xlu0 %2037 }
 0xcb5   : > { %2576 = vcosq.f32 %v2006_v41 }
 0xcb6   : > { %2578 = vsinq.f32 %v2006_v41 }
 0xcb8   : > { %v2107_v62 = vpop.permute.xlu0 %2106 }
 0xcbf   : > { %v2577_v36 = vpop.eup %2576 }
 0xcc0   : > { %v2579_v63 = vpop.eup %2578  ;;  %v2018_v38 = vxor.u32 2147483648, %v2577_v36 }
 0xcc1   : > { %v2015_v40 = vxor.u32 2147483648, %v2579_v63 }
 0xcc2   : > { %v2019_v42 = vsel %vm2017_vm15, %v2018_v38, %v2579_v63 }
 0xcc3   : > { %v2016_v5 = vsel %vm2014_vm10, %v2577_v36, %v2015_v40 }
 0xcc4   : > { %v2020_v16 = vsel %vm2013_vm11, %v2016_v5, %v2019_v42 }
 0xcc5   : > { %v2021_v57 = vsel %vm2010_vm13, nan, %v2020_v16 }
 0xcc6   : > { %v2022_v45 = vmul.f32 %v2021_v57, %v2021_v57 }
 0xcc8   : > { %v2028_v15 = vmul.f32 %v2026_v23, %v2022_v45 }
 0xcca   : > { %v2029_v26 = vadd.f32 %v2028_v15, %v3207_v6 }
 0xccc   : > { %v2032_v8 = vpack.c.bf16 %v2029_v26, %v2029_v26 }
 0xcce   : > { %v2044_v46 = vsel %vm925_vm8, %v2032_v8, 0 }
 0xccf   : > { %2362 = vmatpush3.bf16.msra.mxu0 %v2044_v46 }
 0xcd2   : > { %2364 = vmatmul.mubr.msk.bf16.vlgmr.msra.gmra.mrb[12].mxu0 %vm1099_vm12, %v2253_v29 }
 0xda5   : > { %v2080_v32 = vpop.f32.mrb[12].mxu0 }
 0xda6   : > { %v2081_v49 = vadd.f32 %v2080_v32, %v2038_v11  ;;  %v2365_v35 = vpop.f32.mrb[13].mxu0 }
 0xda7   : > { %v2083_v6 = vpop.f32.mrb[14].mxu0 }
 0xda8   : > { %v2109_v51 = vmul.f32 %v2107_v62, %v2081_v49  ;;  %v2366_v59 = vpop.f32.mrb[15].mxu0 }
 0xdaa   : > { %v2110_v52 = vadd.f32 %v2109_v51, %v2097_v50 }
 0xdac   : > { %2111 = vst [vmem:[%s404_s17] sm:$0xff] %v2110_v52 }
 0xdad   : > { %2593 = shalt.err (!%p2590_p3)
}
 0xdae   : > { %s2594_s16 = scalar_lea.hbm %s3254_s15, 128  ;;  %s2598_s20 = scalar_lea.hbm %s3308_s12, 256 }
 0xdaf   : > { %p2595_p4 = scmp.ne.s32.totalorder %s3254_s15, %s2594_s16  ;;  %p2599_p9 = scmp.lt.u32.totalorder %s3254_s15, %s3308_s12 }
 0xdb0   : > { %p2600_p10 = scmp.lt.u32.totalorder %s2598_s20, %s2594_s16  ;;  %p2602_p12 = scmp.lt.u32.totalorder %s2594_s16, %s3254_s15 }
 0xdb1   : > { %p2596_p7 = pnand %p2595_p4, %p2775_p5 }
 0xdb2   : > { %p2601_p11 = por %p2600_p10, %p2599_p9 }
 0xdb3   : > { %p2597_p8 = pneg %p2596_p7 }
 0xdb4   : > { %p2603_p13 = por %p2602_p12, %p2601_p11 }
 0xdb6   : > { %p2604_p0 = pnand %p2603_p13, %p2597_p8 }
 0xdb8   : > { %2607 = shalt.err (!%p2604_p0)
}
 0xdb9   : > { %2395 = dma.vmem_to_hbm [thread:$0]  (%p2775_p5), %s3256_s18, 128, %s3254_s15, %s2113_s19  }
 0xdba PF: > { %p2401_p1 = scmp.ge.s32.totalorder %s2642_s24, 2  ;;  %s2138_s1 = sand.u32 1, %s2630_s21  }
 0xdbb   : > { %s2139_s25 = scalar_lea.sflag [#allocation4], %s2138_s1 }
 0xdbc   : > { %p2398_p2 = pnand %p2401_p1, %p2779_p6 }
 0xdbe   : > { %2625 = dma.done.wait (!%p2398_p2), %s2139_s25, 128  }
 0xdbf   : > { %2627 = vsyncadd (!%p2398_p2), %s2139_s25, 4294967168  ;;  %p22_p3 = scmp.ge.s32.totalorder %s2762_s27, 4   ;;  %s3323_s21 = smov %s2634_s22 }
 0xdc0   : > { %s3324_s22 = smov %s2638_s23  ;;  %s3325_s23 = smov %s2773_s30 }
 0xdc1   : > { %s3326_s24 = smov %s2762_s27  ;;  %24 = sbr.rel (!%p22_p3) target bundleno = 6 (0x6), region = 126 }
 0xdc8   :  { %2144 = vsyncpa [#allocation4], 1 }
 0xdc9   :  { %2146 = vsyncpa [#allocation4 + $0x1], 1 }

</bundles_post_ra>
